<compile_context>
chip_gen: v7x
topology: tpu7x:2x2x1
jax: 0.10.0
libtpu: 0.0.40
codegen_flags: <defaults>
</compile_context>

<pallas_src>
import functools

import jax
import jax.numpy as jnp
import numpy as np
from jax.experimental import pallas as pl
from jax.experimental.pallas import tpu as pltpu


def _round_up(x, m):
    return (x + m - 1) // m * m


def _make_lstm_chunk_kernel(seq_len, t_chunk, unroll):
    """Builds the chunked-LSTM kernel body (seq_len / t_chunk are static)."""
    need_mask = (seq_len % t_chunk) != 0

    def kernel(x_ref, wih_ref, whh_ref, b_ref, out_ref, h_sc, c_sc, gx_sc):
        """One grid step == one chunk of t_chunk timesteps.

        x_ref  : (T*B, E)   bf16  time-major embedded inputs for this chunk
        wih_ref: (E, 4H)    bf16  input->gate weights, gate order (i, f, o, g)
                                   (i/f/o columns pre-scaled by 0.5)
        whh_ref: (H, 4H)    bf16  hidden->gate weights (same layout/scaling)
        b_ref  : (1, 4H)    f32   b_ih + b_hh (reordered/scaled/padded)
        out_ref: (B, H)     f32   final hidden state (written on last chunk)
        h_sc/c_sc: (B, H)   f32   recurrent state, persists across chunks
        gx_sc  : (T*B, 4H)  f32   precomputed input-side gates for this chunk
        """
        chunk = pl.program_id(0)

        @pl.when(chunk == 0)
        def _():
            h_sc[...] = jnp.zeros_like(h_sc)
            c_sc[...] = jnp.zeros_like(c_sc)

        B, H = h_sc.shape

        # --- hoisted, time-parallel input projection: one wide MXU matmul ---
        # gates_x = x @ W_ih^T + (b_ih + b_hh) for every timestep in the chunk.
        gx_sc[...] = (
            jnp.dot(x_ref[...], wih_ref[...],
                    preferred_element_type=jnp.float32)
            + b_ref[...]
        )

        base = chunk * t_chunk  # first global timestep of this chunk

        # --- serial recurrence over the chunk (only h @ W_hh^T per step) ----
        def step(t, carry):
            h, c = carry
            off = pl.multiple_of(t * B, 8)            # sublane-aligned slice
            gx_t = gx_sc[pl.ds(off, B), :]            # (B, 4H) f32
            # Recurrent weights are read from VMEM inside the step (no vreg
            # hoist -> no register pressure / spill traffic on the serial
            # critical path).  bf16 operands, f32 MXU accumulation.
            gates = gx_t + jnp.dot(h.astype(jnp.bfloat16), whh_ref[...],
                                   preferred_element_type=jnp.float32)
            # Gate layout (i, f, o, g).  Because the (i, f, o) columns of the
            # weights/bias were pre-scaled by 0.5, sigmoid(z)=0.5*tanh(z/2)+0.5
            # becomes a single fused tanh over the whole (B, 4H) slab.
            th = jnp.tanh(gates)
            ifo = 0.5 * th[:, :3 * H] + 0.5
            i_g = ifo[:, :H]
            f_g = ifo[:, H:2 * H]
            o_g = ifo[:, 2 * H:]
            g_g = th[:, 3 * H:]
            c_new = f_g * c + i_g * g_g
            h_new = o_g * jnp.tanh(c_new)
            if need_mask:
                # Ragged last chunk: steps past seq_len leave the state as-is.
                valid = (base + t) < seq_len
                h_new = jnp.where(valid, h_new, h)
                c_new = jnp.where(valid, c_new, c)
            return h_new, c_new

        h_f, c_f = jax.lax.fori_loop(0, t_chunk, step,
                                     (h_sc[...], c_sc[...]), unroll=unroll)
        h_sc[...] = h_f
        c_sc[...] = c_f

        @pl.when(chunk == pl.num_programs(0) - 1)
        def _():
            out_ref[...] = h_f

    return kernel


def lstm_sequence_pallas(x_emb_flat, w_ih_t, w_hh_t, bias, *, seq_len,
                         batch_pad, t_chunk):
    """x_emb_flat: (S_pad*Bp, Ep) bf16 time-major; w_ih_t: (Ep, 4Hp) bf16;
    w_hh_t: (Hp, 4Hp) bf16; bias: (1, 4Hp) f32.  Returns final hidden state
    (Bp, Hp) f32 for the first `seq_len` timesteps."""
    Bp = batch_pad
    Ep = x_emb_flat.shape[1]
    Hp = w_hh_t.shape[0]
    GH = 4 * Hp
    n_chunks = x_emb_flat.shape[0] // (t_chunk * Bp)

    # Explicit VMEM budget (covers v7x's smaller 64 MiB VMEM as well).
    est_bytes = (
        2 * t_chunk * Bp * Ep * 2      # x chunk, double-buffered, bf16
        + t_chunk * Bp * GH * 4        # gx_sc scratch, f32
        + 2 * (Ep + Hp) * GH * 2       # weights, double-buffered, bf16
        + 2 * GH * 4                   # bias
        + 2 * Bp * Hp * 4              # h / c state
        + 2 * Bp * Hp * 4              # output block
    )
    vmem_limit = int(min(48 << 20, max(16 << 20, 2 * est_bytes)))

    kernel = _make_lstm_chunk_kernel(seq_len, t_chunk,
                                     unroll=max(1, min(8, t_chunk)))

    return pl.pallas_call(
        kernel,
        out_shape=jax.ShapeDtypeStruct((Bp, Hp), jnp.float32),
        grid_spec=pltpu.PrefetchScalarGridSpec(
            num_scalar_prefetch=0,
            grid=(n_chunks,),
            in_specs=[
                pl.BlockSpec((t_chunk * Bp, Ep), lambda c: (c, 0)),  # x chunk
                pl.BlockSpec((Ep, GH), lambda c: (0, 0)),            # W_ih^T
                pl.BlockSpec((Hp, GH), lambda c: (0, 0)),            # W_hh^T
                pl.BlockSpec((1, GH), lambda c: (0, 0)),             # bias
            ],
            out_specs=pl.BlockSpec((Bp, Hp), lambda c: (0, 0)),
            scratch_shapes=[
                pltpu.VMEM((Bp, Hp), jnp.float32),                   # h state
                pltpu.VMEM((Bp, Hp), jnp.float32),                   # c state
                pltpu.VMEM((t_chunk * Bp, GH), jnp.float32),         # gates_x
            ],
        ),
        compiler_params=pltpu.CompilerParams(
            dimension_semantics=("arbitrary",),   # time recurrence is serial
            vmem_limit_bytes=vmem_limit,
        ),
    )(x_emb_flat, w_ih_t, w_hh_t, bias)


def prepare_params(raw, hidden):
    """Reorder gates to (i, f, o, g), pre-scale the sigmoid gates by 0.5,
    transpose, and zero-pad to lane-aligned shapes (H, E -> multiples of 128).
    Zero padding is exact: padded gate columns keep pre-activation 0, so the
    padded h/c lanes remain 0 forever (with the 0.5 scale: f=0.5, i=0.5, g=0,
    o=0.5 -> c stays 0, h stays 0)."""
    H = hidden
    E = H                                # LSTMCell(input_size=E, hidden=H)
    Hp = _round_up(H, 128)
    Ep = _round_up(E, 128)

    emb = np.asarray(raw["embedding"], np.float32)         # (V, E)
    w_ih = np.asarray(raw["w_ih"], np.float32)             # (4H, E) rows i|f|g|o
    w_hh = np.asarray(raw["w_hh"], np.float32)             # (4H, H)
    b = np.asarray(raw["b_ih"], np.float32) + np.asarray(raw["b_hh"], np.float32)

    perm = [0, 1, 3, 2]                  # (i, f, g, o) -> (i, f, o, g)
    scale = [0.5, 0.5, 0.5, 1.0]         # sigmoid gates pre-scaled (exact in bf16)

    def pack_w(w, in_dim, in_pad):       # -> (in_pad, 4*Hp)
        out = np.zeros((in_pad, 4 * Hp), np.float32)
        for k, (g, s) in enumerate(zip(perm, scale)):
            out[:in_dim, k * Hp:k * Hp + H] = s * w[g * H:(g + 1) * H, :].T
        return out

    bias = np.zeros((1, 4 * Hp), np.float32)
    for k, (g, s) in enumerate(zip(perm, scale)):
        bias[0, k * Hp:k * Hp + H] = s * b[g * H:(g + 1) * H]

    emb_pad = np.zeros((emb.shape[0], Ep), np.float32)
    emb_pad[:, :E] = emb

    return {
        "hidden": H,
        # bf16 table: the XLA gather produces bf16 activations directly (no
        # extra f32 HBM round-trip just to cast before the kernel).
        "embedding_pad": jnp.asarray(emb_pad, jnp.bfloat16),
        "w_ih_t_pad": jnp.asarray(pack_w(w_ih, E, Ep), jnp.bfloat16),  # (Ep,4Hp)
        "w_hh_t_pad": jnp.asarray(pack_w(w_hh, H, Hp), jnp.bfloat16),  # (Hp,4Hp)
        "bias_pad": jnp.asarray(bias),                                 # (1,4Hp)
    }


def number_sequence_encoder(x_tokens, prepared, *, max_t_chunk=64):
    """Forward pass matching NumberSequenceEncoder.forward.

    x_tokens: (batch, seq_len) int32 token ids.
    Returns final hidden state h of shape (batch, embedding_size), f32.
    """
    B, S = x_tokens.shape
    H = prepared["hidden"]
    Hp = prepared["w_hh_t_pad"].shape[0]
    Ep = prepared["embedding_pad"].shape[1]
    Bp = _round_up(B, 8)

    # VMEM-budget-aware time-chunk size (any S works; ragged tail is masked
    # inside the kernel, so no per-step grid overhead even for prime S).
    per_step_bytes = Bp * (2 * Ep * 2 + 4 * Hp * 4)   # x dbl-buf + gx_sc row
    budget = 8 << 20
    t_chunk = max(1, min(S, max_t_chunk, budget // per_step_bytes))
    n_chunks = (S + t_chunk - 1) // t_chunk
    S_pad = n_chunks * t_chunk

    # glue: time-major transpose, batch/time pad, embedding gather (bf16)
    x_tm = jnp.transpose(x_tokens, (1, 0))                      # (S, B)
    if Bp > B:
        x_tm = jnp.pad(x_tm, ((0, 0), (0, Bp - B)))             # (S, Bp)
    if S_pad > S:
        x_tm = jnp.pad(x_tm, ((0, S_pad - S), (0, 0)))          # (S_pad, Bp)
    x_emb = jnp.take(prepared["embedding_pad"], x_tm, axis=0)   # bf16
    x_flat = x_emb.reshape(S_pad * Bp, Ep)

    h = lstm_sequence_pallas(
        x_flat, prepared["w_ih_t_pad"], prepared["w_hh_t_pad"],
        prepared["bias_pad"], seq_len=S, batch_pad=Bp, t_chunk=t_chunk)
    return h[:B, :H]


def _reference_forward(x_tokens, raw):
    """Pure-JAX f32 reference of the PyTorch module semantics."""
    emb = raw["embedding"]
    w_ih = raw["w_ih"]
    w_hh = raw["w_hh"]
    b = raw["b_ih"] + raw["b_hh"]
    H = w_hh.shape[1]

    x_tm = jnp.transpose(x_tokens, (1, 0))
    x_emb = jnp.take(emb, x_tm, axis=0).astype(jnp.float32)
    S, B, _ = x_emb.shape

    h = jnp.zeros((B, H), jnp.float32)
    c = jnp.zeros((B, H), jnp.float32)
    for s in range(S):
        gates = x_emb[s] @ w_ih.T + h @ w_hh.T + b
        i_g = jax.nn.sigmoid(gates[:, 0 * H:1 * H])
        f_g = jax.nn.sigmoid(gates[:, 1 * H:2 * H])
        g_g = jnp.tanh(gates[:, 2 * H:3 * H])
        o_g = jax.nn.sigmoid(gates[:, 3 * H:4 * H])
        c = f_g * c + i_g * g_g
        h = o_g * jnp.tanh(c)
    return h


def init_params(key, num_values, embedding_size):
    """Deterministic init mirroring the PyTorch module's parameter shapes."""
    E = H = embedding_size
    k_emb, k_wih, k_whh, k_bih, k_bhh = jax.random.split(key, 5)
    bound = 1.0 / np.sqrt(H)
    return {
        "embedding": jax.random.normal(k_emb, (num_values, E), jnp.float32),
        "w_ih": jax.random.uniform(k_wih, (4 * H, E), jnp.float32, -bound, bound),
        "w_hh": jax.random.uniform(k_whh, (4 * H, H), jnp.float32, -bound, bound),
        "b_ih": jax.random.uniform(k_bih, (4 * H,), jnp.float32, -bound, bound),
        "b_hh": jax.random.uniform(k_bhh, (4 * H,), jnp.float32, -bound, bound),
    }


if __name__ == "__main__":
    num_values = 10
    embedding_size = 32     # small hidden size for the synthetic test

    key = jax.random.PRNGKey(0)
    k_params, k_tok1, k_tok2 = jax.random.split(key, 3)
    raw_params = init_params(k_params, num_values, embedding_size)
    prepared = prepare_params(raw_params, embedding_size)

    # Case 1: batch=4, seq_len=8 -> whole sequence in one chunk.
    x1 = jax.random.randint(k_tok1, (4, 8), 0, num_values, dtype=jnp.int32)
    out1 = jax.block_until_ready(number_sequence_encoder(x1, prepared))
    ref1 = jax.block_until_ready(_reference_forward(x1, raw_params))
    assert out1.shape == (4, embedding_size)
    # bf16 MXU operands (f32 accumulation) vs. pure-f32 reference -> ~1e-3
    # level differences; tolerance loosened accordingly.
    np.testing.assert_allclose(np.asarray(out1), np.asarray(ref1),
                               rtol=2e-2, atol=2e-2)

    # Case 2: batch=3, prime seq_len=7 with a forced small chunk -> exercises
    # the ragged (masked) last-chunk path.
    x2 = jax.random.randint(k_tok2, (3, 7), 0, num_values, dtype=jnp.int32)
    out2 = jax.block_until_ready(
        number_sequence_encoder(x2, prepared, max_t_chunk=4))
    ref2 = jax.block_until_ready(_reference_forward(x2, raw_params))
    np.testing.assert_allclose(np.asarray(out2), np.asarray(ref2),
                               rtol=2e-2, atol=2e-2)

    print("KERNEL_OK")
</pallas_src>

<mosaic_0001>
module attributes {stable_mosaic.version = 11 : i64} {
  func.func @kernel(%arg0: i32, %arg1: memref<64x128xbf16, #tpu.memory_space<vmem>>, %arg2: memref<128x512xbf16, #tpu.memory_space<vmem>>, %arg3: memref<128x512xbf16, #tpu.memory_space<vmem>>, %arg4: memref<1x512xf32, #tpu.memory_space<vmem>>, %arg5: memref<8x128xf32, #tpu.memory_space<vmem>>, %arg6: memref<8x128xf32, #tpu.memory_space<vmem>>, %arg7: memref<8x128xf32, #tpu.memory_space<vmem>>, %arg8: memref<64x512xf32, #tpu.memory_space<vmem>>) attributes {dimension_semantics = [#tpu.dimension_semantics<arbitrary>], iteration_bounds = array<i64: 1>, scalar_prefetch = 0 : i64, scratch_operands = 3 : i64, tpu.core_type = #tpu.core_type<tc>, window_params = [{transform_indices = @transform_0, window_bounds = array<i64: 64, 128>}, {pipeline_mode = #tpu.pipeline_mode<synchronous>, transform_indices = @transform_1, window_bounds = array<i64: 128, 512>}, {pipeline_mode = #tpu.pipeline_mode<synchronous>, transform_indices = @transform_2, window_bounds = array<i64: 128, 512>}, {pipeline_mode = #tpu.pipeline_mode<synchronous>, transform_indices = @transform_3, window_bounds = array<i64: 1, 512>}, {pipeline_mode = #tpu.pipeline_mode<synchronous>, transform_indices = @transform_4, window_bounds = array<i64: 8, 128>}]} {
    %c0_i32 = arith.constant 0 : i32
    %0 = arith.cmpi eq, %arg0, %c0_i32 : i32
    %1 = arith.extui %0 : i1 to i32
    %c0_i32_0 = arith.constant 0 : i32
    %2 = arith.cmpi ne, %1, %c0_i32_0 : i32
    scf.if %2 {
      %cst_75 = arith.constant 0.000000e+00 : f32
      %201 = vector.broadcast %cst_75 : f32 to vector<8x128xf32>
      %c0_76 = arith.constant 0 : index
      %c0_77 = arith.constant 0 : index
      %202 = vector.load %arg6[%c0_76, %c0_77] : memref<8x128xf32, #tpu.memory_space<vmem>>, vector<8x128xf32>
      tpu.vector_store %arg6[%c0_76, %c0_77], %201 {strides = array<i32>} : memref<8x128xf32, #tpu.memory_space<vmem>>, vector<8x128xf32>,
      %cst_78 = arith.constant 0.000000e+00 : f32
      %203 = vector.broadcast %cst_78 : f32 to vector<8x128xf32>
      %c0_79 = arith.constant 0 : index
      %c0_80 = arith.constant 0 : index
      %204 = vector.load %arg7[%c0_79, %c0_80] : memref<8x128xf32, #tpu.memory_space<vmem>>, vector<8x128xf32>
      tpu.vector_store %arg7[%c0_79, %c0_80], %203 {strides = array<i32>} : memref<8x128xf32, #tpu.memory_space<vmem>>, vector<8x128xf32>,
    } else {
    }
    %c0 = arith.constant 0 : index
    %c0_1 = arith.constant 0 : index
    %3 = vector.load %arg1[%c0, %c0_1] : memref<64x128xbf16, #tpu.memory_space<vmem>>, vector<64x128xbf16>
    %c0_2 = arith.constant 0 : index
    %c0_3 = arith.constant 0 : index
    %4 = vector.load %arg2[%c0_2, %c0_3] : memref<128x512xbf16, #tpu.memory_space<vmem>>, vector<128x512xbf16>
    %cst = arith.constant dense<0.000000e+00> : vector<64x512xf32>
    %5 = tpu.matmul %3, %4, %cst {dimension_numbers = #tpu.dot_dimension_numbers<[1], [0], [0], [1], [0, 0, 1, 1], [], []>} : vector<64x128xbf16>, vector<128x512xbf16>, vector<64x512xf32> -> vector<64x512xf32>
    %c0_4 = arith.constant 0 : index
    %c0_5 = arith.constant 0 : index
    %6 = vector.load %arg4[%c0_4, %c0_5] : memref<1x512xf32, #tpu.memory_space<vmem>>, vector<1x512xf32>
    %7 = vector.broadcast %6 : vector<1x512xf32> to vector<64x512xf32>
    %8 = arith.addf %5, %7 : vector<64x512xf32>
    %c0_6 = arith.constant 0 : index
    %c0_7 = arith.constant 0 : index
    %9 = vector.load %arg8[%c0_6, %c0_7] : memref<64x512xf32, #tpu.memory_space<vmem>>, vector<64x512xf32>
    tpu.vector_store %arg8[%c0_6, %c0_7], %8 {strides = array<i32>} : memref<64x512xf32, #tpu.memory_space<vmem>>, vector<64x512xf32>,
    %c0_8 = arith.constant 0 : index
    %c0_9 = arith.constant 0 : index
    %10 = vector.load %arg6[%c0_8, %c0_9] : memref<8x128xf32, #tpu.memory_space<vmem>>, vector<8x128xf32>
    %c0_10 = arith.constant 0 : index
    %c0_11 = arith.constant 0 : index
    %11 = vector.load %arg7[%c0_10, %c0_11] : memref<8x128xf32, #tpu.memory_space<vmem>>, vector<8x128xf32>
    %c0_i32_12 = arith.constant 0 : i32
    %c8_i32 = arith.constant 8 : i32
    %12 = arith.muli %c0_i32_12, %c8_i32 : i32
    %13 = tpu.assume_multiple %12, 8 : i32
    %14 = arith.index_cast %13 : i32 to index
    %c0_13 = arith.constant 0 : index
    %15 = vector.load %arg8[%14, %c0_13] : memref<64x512xf32, #tpu.memory_space<vmem>>, vector<8x512xf32>
    %16 = arith.truncf %10 : vector<8x128xf32> to vector<8x128xbf16>
    %c0_14 = arith.constant 0 : index
    %c0_15 = arith.constant 0 : index
    %17 = vector.load %arg3[%c0_14, %c0_15] : memref<128x512xbf16, #tpu.memory_space<vmem>>, vector<128x512xbf16>
    %cst_16 = arith.constant dense<0.000000e+00> : vector<8x512xf32>
    %18 = tpu.matmul %16, %17, %cst_16 {dimension_numbers = #tpu.dot_dimension_numbers<[1], [0], [0], [1], [0, 0, 1, 1], [], []>} : vector<8x128xbf16>, vector<128x512xbf16>, vector<8x512xf32> -> vector<8x512xf32>
    %19 = arith.addf %15, %18 : vector<8x512xf32>
    %20 = math.tanh %19 : vector<8x512xf32>
    %21 = vector.extract_strided_slice %20 {offsets = [0, 0], sizes = [8, 384], strides = [1, 1]} : vector<8x512xf32> to vector<8x384xf32>
    %cst_17 = arith.constant 5.000000e-01 : f32
    %22 = vector.broadcast %cst_17 : f32 to vector<8x384xf32>
    %23 = arith.mulf %22, %21 : vector<8x384xf32>
    %cst_18 = arith.constant 5.000000e-01 : f32
    %24 = vector.broadcast %cst_18 : f32 to vector<8x384xf32>
    %25 = arith.addf %23, %24 : vector<8x384xf32>
    %26 = vector.extract_strided_slice %25 {offsets = [0, 0], sizes = [8, 128], strides = [1, 1]} : vector<8x384xf32> to vector<8x128xf32>
    %27 = vector.extract_strided_slice %25 {offsets = [0, 128], sizes = [8, 128], strides = [1, 1]} : vector<8x384xf32> to vector<8x128xf32>
    %28 = vector.extract_strided_slice %25 {offsets = [0, 256], sizes = [8, 128], strides = [1, 1]} : vector<8x384xf32> to vector<8x128xf32>
    %29 = vector.extract_strided_slice %20 {offsets = [0, 384], sizes = [8, 128], strides = [1, 1]} : vector<8x512xf32> to vector<8x128xf32>
    %30 = arith.mulf %27, %11 : vector<8x128xf32>
    %31 = arith.mulf %26, %29 : vector<8x128xf32>
    %32 = arith.addf %30, %31 : vector<8x128xf32>
    %33 = math.tanh %32 : vector<8x128xf32>
    %34 = arith.mulf %28, %33 : vector<8x128xf32>
    %c1_i32 = arith.constant 1 : i32
    %c8_i32_19 = arith.constant 8 : i32
    %35 = arith.muli %c1_i32, %c8_i32_19 : i32
    %36 = tpu.assume_multiple %35, 8 : i32
    %37 = arith.index_cast %36 : i32 to index
    %c0_20 = arith.constant 0 : index
    %38 = vector.load %arg8[%37, %c0_20] : memref<64x512xf32, #tpu.memory_space<vmem>>, vector<8x512xf32>
    %39 = arith.truncf %34 : vector<8x128xf32> to vector<8x128xbf16>
    %c0_21 = arith.constant 0 : index
    %c0_22 = arith.constant 0 : index
    %40 = vector.load %arg3[%c0_21, %c0_22] : memref<128x512xbf16, #tpu.memory_space<vmem>>, vector<128x512xbf16>
    %cst_23 = arith.constant dense<0.000000e+00> : vector<8x512xf32>
    %41 = tpu.matmul %39, %40, %cst_23 {dimension_numbers = #tpu.dot_dimension_numbers<[1], [0], [0], [1], [0, 0, 1, 1], [], []>} : vector<8x128xbf16>, vector<128x512xbf16>, vector<8x512xf32> -> vector<8x512xf32>
    %42 = arith.addf %38, %41 : vector<8x512xf32>
    %43 = math.tanh %42 : vector<8x512xf32>
    %44 = vector.extract_strided_slice %43 {offsets = [0, 0], sizes = [8, 384], strides = [1, 1]} : vector<8x512xf32> to vector<8x384xf32>
    %cst_24 = arith.constant 5.000000e-01 : f32
    %45 = vector.broadcast %cst_24 : f32 to vector<8x384xf32>
    %46 = arith.mulf %45, %44 : vector<8x384xf32>
    %cst_25 = arith.constant 5.000000e-01 : f32
    %47 = vector.broadcast %cst_25 : f32 to vector<8x384xf32>
    %48 = arith.addf %46, %47 : vector<8x384xf32>
    %49 = vector.extract_strided_slice %48 {offsets = [0, 0], sizes = [8, 128], strides = [1, 1]} : vector<8x384xf32> to vector<8x128xf32>
    %50 = vector.extract_strided_slice %48 {offsets = [0, 128], sizes = [8, 128], strides = [1, 1]} : vector<8x384xf32> to vector<8x128xf32>
    %51 = vector.extract_strided_slice %48 {offsets = [0, 256], sizes = [8, 128], strides = [1, 1]} : vector<8x384xf32> to vector<8x128xf32>
    %52 = vector.extract_strided_slice %43 {offsets = [0, 384], sizes = [8, 128], strides = [1, 1]} : vector<8x512xf32> to vector<8x128xf32>
    %53 = arith.mulf %50, %32 : vector<8x128xf32>
    %54 = arith.mulf %49, %52 : vector<8x128xf32>
    %55 = arith.addf %53, %54 : vector<8x128xf32>
    %56 = math.tanh %55 : vector<8x128xf32>
    %57 = arith.mulf %51, %56 : vector<8x128xf32>
    %c2_i32 = arith.constant 2 : i32
    %c8_i32_26 = arith.constant 8 : i32
    %58 = arith.muli %c2_i32, %c8_i32_26 : i32
    %59 = tpu.assume_multiple %58, 8 : i32
    %60 = arith.index_cast %59 : i32 to index
    %c0_27 = arith.constant 0 : index
    %61 = vector.load %arg8[%60, %c0_27] : memref<64x512xf32, #tpu.memory_space<vmem>>, vector<8x512xf32>
    %62 = arith.truncf %57 : vector<8x128xf32> to vector<8x128xbf16>
    %c0_28 = arith.constant 0 : index
    %c0_29 = arith.constant 0 : index
    %63 = vector.load %arg3[%c0_28, %c0_29] : memref<128x512xbf16, #tpu.memory_space<vmem>>, vector<128x512xbf16>
    %cst_30 = arith.constant dense<0.000000e+00> : vector<8x512xf32>
    %64 = tpu.matmul %62, %63, %cst_30 {dimension_numbers = #tpu.dot_dimension_numbers<[1], [0], [0], [1], [0, 0, 1, 1], [], []>} : vector<8x128xbf16>, vector<128x512xbf16>, vector<8x512xf32> -> vector<8x512xf32>
    %65 = arith.addf %61, %64 : vector<8x512xf32>
    %66 = math.tanh %65 : vector<8x512xf32>
    %67 = vector.extract_strided_slice %66 {offsets = [0, 0], sizes = [8, 384], strides = [1, 1]} : vector<8x512xf32> to vector<8x384xf32>
    %cst_31 = arith.constant 5.000000e-01 : f32
    %68 = vector.broadcast %cst_31 : f32 to vector<8x384xf32>
    %69 = arith.mulf %68, %67 : vector<8x384xf32>
    %cst_32 = arith.constant 5.000000e-01 : f32
    %70 = vector.broadcast %cst_32 : f32 to vector<8x384xf32>
    %71 = arith.addf %69, %70 : vector<8x384xf32>
    %72 = vector.extract_strided_slice %71 {offsets = [0, 0], sizes = [8, 128], strides = [1, 1]} : vector<8x384xf32> to vector<8x128xf32>
    %73 = vector.extract_strided_slice %71 {offsets = [0, 128], sizes = [8, 128], strides = [1, 1]} : vector<8x384xf32> to vector<8x128xf32>
    %74 = vector.extract_strided_slice %71 {offsets = [0, 256], sizes = [8, 128], strides = [1, 1]} : vector<8x384xf32> to vector<8x128xf32>
    %75 = vector.extract_strided_slice %66 {offsets = [0, 384], sizes = [8, 128], strides = [1, 1]} : vector<8x512xf32> to vector<8x128xf32>
    %76 = arith.mulf %73, %55 : vector<8x128xf32>
    %77 = arith.mulf %72, %75 : vector<8x128xf32>
    %78 = arith.addf %76, %77 : vector<8x128xf32>
    %79 = math.tanh %78 : vector<8x128xf32>
    %80 = arith.mulf %74, %79 : vector<8x128xf32>
    %c3_i32 = arith.constant 3 : i32
    %c8_i32_33 = arith.constant 8 : i32
    %81 = arith.muli %c3_i32, %c8_i32_33 : i32
    %82 = tpu.assume_multiple %81, 8 : i32
    %83 = arith.index_cast %82 : i32 to index
    %c0_34 = arith.constant 0 : index
    %84 = vector.load %arg8[%83, %c0_34] : memref<64x512xf32, #tpu.memory_space<vmem>>, vector<8x512xf32>
    %85 = arith.truncf %80 : vector<8x128xf32> to vector<8x128xbf16>
    %c0_35 = arith.constant 0 : index
    %c0_36 = arith.constant 0 : index
    %86 = vector.load %arg3[%c0_35, %c0_36] : memref<128x512xbf16, #tpu.memory_space<vmem>>, vector<128x512xbf16>
    %cst_37 = arith.constant dense<0.000000e+00> : vector<8x512xf32>
    %87 = tpu.matmul %85, %86, %cst_37 {dimension_numbers = #tpu.dot_dimension_numbers<[1], [0], [0], [1], [0, 0, 1, 1], [], []>} : vector<8x128xbf16>, vector<128x512xbf16>, vector<8x512xf32> -> vector<8x512xf32>
    %88 = arith.addf %84, %87 : vector<8x512xf32>
    %89 = math.tanh %88 : vector<8x512xf32>
    %90 = vector.extract_strided_slice %89 {offsets = [0, 0], sizes = [8, 384], strides = [1, 1]} : vector<8x512xf32> to vector<8x384xf32>
    %cst_38 = arith.constant 5.000000e-01 : f32
    %91 = vector.broadcast %cst_38 : f32 to vector<8x384xf32>
    %92 = arith.mulf %91, %90 : vector<8x384xf32>
    %cst_39 = arith.constant 5.000000e-01 : f32
    %93 = vector.broadcast %cst_39 : f32 to vector<8x384xf32>
    %94 = arith.addf %92, %93 : vector<8x384xf32>
    %95 = vector.extract_strided_slice %94 {offsets = [0, 0], sizes = [8, 128], strides = [1, 1]} : vector<8x384xf32> to vector<8x128xf32>
    %96 = vector.extract_strided_slice %94 {offsets = [0, 128], sizes = [8, 128], strides = [1, 1]} : vector<8x384xf32> to vector<8x128xf32>
    %97 = vector.extract_strided_slice %94 {offsets = [0, 256], sizes = [8, 128], strides = [1, 1]} : vector<8x384xf32> to vector<8x128xf32>
    %98 = vector.extract_strided_slice %89 {offsets = [0, 384], sizes = [8, 128], strides = [1, 1]} : vector<8x512xf32> to vector<8x128xf32>
    %99 = arith.mulf %96, %78 : vector<8x128xf32>
    %100 = arith.mulf %95, %98 : vector<8x128xf32>
    %101 = arith.addf %99, %100 : vector<8x128xf32>
    %102 = math.tanh %101 : vector<8x128xf32>
    %103 = arith.mulf %97, %102 : vector<8x128xf32>
    %c4_i32 = arith.constant 4 : i32
    %c8_i32_40 = arith.constant 8 : i32
    %104 = arith.muli %c4_i32, %c8_i32_40 : i32
    %105 = tpu.assume_multiple %104, 8 : i32
    %106 = arith.index_cast %105 : i32 to index
    %c0_41 = arith.constant 0 : index
    %107 = vector.load %arg8[%106, %c0_41] : memref<64x512xf32, #tpu.memory_space<vmem>>, vector<8x512xf32>
    %108 = arith.truncf %103 : vector<8x128xf32> to vector<8x128xbf16>
    %c0_42 = arith.constant 0 : index
    %c0_43 = arith.constant 0 : index
    %109 = vector.load %arg3[%c0_42, %c0_43] : memref<128x512xbf16, #tpu.memory_space<vmem>>, vector<128x512xbf16>
    %cst_44 = arith.constant dense<0.000000e+00> : vector<8x512xf32>
    %110 = tpu.matmul %108, %109, %cst_44 {dimension_numbers = #tpu.dot_dimension_numbers<[1], [0], [0], [1], [0, 0, 1, 1], [], []>} : vector<8x128xbf16>, vector<128x512xbf16>, vector<8x512xf32> -> vector<8x512xf32>
    %111 = arith.addf %107, %110 : vector<8x512xf32>
    %112 = math.tanh %111 : vector<8x512xf32>
    %113 = vector.extract_strided_slice %112 {offsets = [0, 0], sizes = [8, 384], strides = [1, 1]} : vector<8x512xf32> to vector<8x384xf32>
    %cst_45 = arith.constant 5.000000e-01 : f32
    %114 = vector.broadcast %cst_45 : f32 to vector<8x384xf32>
    %115 = arith.mulf %114, %113 : vector<8x384xf32>
    %cst_46 = arith.constant 5.000000e-01 : f32
    %116 = vector.broadcast %cst_46 : f32 to vector<8x384xf32>
    %117 = arith.addf %115, %116 : vector<8x384xf32>
    %118 = vector.extract_strided_slice %117 {offsets = [0, 0], sizes = [8, 128], strides = [1, 1]} : vector<8x384xf32> to vector<8x128xf32>
    %119 = vector.extract_strided_slice %117 {offsets = [0, 128], sizes = [8, 128], strides = [1, 1]} : vector<8x384xf32> to vector<8x128xf32>
    %120 = vector.extract_strided_slice %117 {offsets = [0, 256], sizes = [8, 128], strides = [1, 1]} : vector<8x384xf32> to vector<8x128xf32>
    %121 = vector.extract_strided_slice %112 {offsets = [0, 384], sizes = [8, 128], strides = [1, 1]} : vector<8x512xf32> to vector<8x128xf32>
    %122 = arith.mulf %119, %101 : vector<8x128xf32>
    %123 = arith.mulf %118, %121 : vector<8x128xf32>
    %124 = arith.addf %122, %123 : vector<8x128xf32>
    %125 = math.tanh %124 : vector<8x128xf32>
    %126 = arith.mulf %120, %125 : vector<8x128xf32>
    %c5_i32 = arith.constant 5 : i32
    %c8_i32_47 = arith.constant 8 : i32
    %127 = arith.muli %c5_i32, %c8_i32_47 : i32
    %128 = tpu.assume_multiple %127, 8 : i32
    %129 = arith.index_cast %128 : i32 to index
    %c0_48 = arith.constant 0 : index
    %130 = vector.load %arg8[%129, %c0_48] : memref<64x512xf32, #tpu.memory_space<vmem>>, vector<8x512xf32>
    %131 = arith.truncf %126 : vector<8x128xf32> to vector<8x128xbf16>
    %c0_49 = arith.constant 0 : index
    %c0_50 = arith.constant 0 : index
    %132 = vector.load %arg3[%c0_49, %c0_50] : memref<128x512xbf16, #tpu.memory_space<vmem>>, vector<128x512xbf16>
    %cst_51 = arith.constant dense<0.000000e+00> : vector<8x512xf32>
    %133 = tpu.matmul %131, %132, %cst_51 {dimension_numbers = #tpu.dot_dimension_numbers<[1], [0], [0], [1], [0, 0, 1, 1], [], []>} : vector<8x128xbf16>, vector<128x512xbf16>, vector<8x512xf32> -> vector<8x512xf32>
    %134 = arith.addf %130, %133 : vector<8x512xf32>
    %135 = math.tanh %134 : vector<8x512xf32>
    %136 = vector.extract_strided_slice %135 {offsets = [0, 0], sizes = [8, 384], strides = [1, 1]} : vector<8x512xf32> to vector<8x384xf32>
    %cst_52 = arith.constant 5.000000e-01 : f32
    %137 = vector.broadcast %cst_52 : f32 to vector<8x384xf32>
    %138 = arith.mulf %137, %136 : vector<8x384xf32>
    %cst_53 = arith.constant 5.000000e-01 : f32
    %139 = vector.broadcast %cst_53 : f32 to vector<8x384xf32>
    %140 = arith.addf %138, %139 : vector<8x384xf32>
    %141 = vector.extract_strided_slice %140 {offsets = [0, 0], sizes = [8, 128], strides = [1, 1]} : vector<8x384xf32> to vector<8x128xf32>
    %142 = vector.extract_strided_slice %140 {offsets = [0, 128], sizes = [8, 128], strides = [1, 1]} : vector<8x384xf32> to vector<8x128xf32>
    %143 = vector.extract_strided_slice %140 {offsets = [0, 256], sizes = [8, 128], strides = [1, 1]} : vector<8x384xf32> to vector<8x128xf32>
    %144 = vector.extract_strided_slice %135 {offsets = [0, 384], sizes = [8, 128], strides = [1, 1]} : vector<8x512xf32> to vector<8x128xf32>
    %145 = arith.mulf %142, %124 : vector<8x128xf32>
    %146 = arith.mulf %141, %144 : vector<8x128xf32>
    %147 = arith.addf %145, %146 : vector<8x128xf32>
    %148 = math.tanh %147 : vector<8x128xf32>
    %149 = arith.mulf %143, %148 : vector<8x128xf32>
    %c6_i32 = arith.constant 6 : i32
    %c8_i32_54 = arith.constant 8 : i32
    %150 = arith.muli %c6_i32, %c8_i32_54 : i32
    %151 = tpu.assume_multiple %150, 8 : i32
    %152 = arith.index_cast %151 : i32 to index
    %c0_55 = arith.constant 0 : index
    %153 = vector.load %arg8[%152, %c0_55] : memref<64x512xf32, #tpu.memory_space<vmem>>, vector<8x512xf32>
    %154 = arith.truncf %149 : vector<8x128xf32> to vector<8x128xbf16>
    %c0_56 = arith.constant 0 : index
    %c0_57 = arith.constant 0 : index
    %155 = vector.load %arg3[%c0_56, %c0_57] : memref<128x512xbf16, #tpu.memory_space<vmem>>, vector<128x512xbf16>
    %cst_58 = arith.constant dense<0.000000e+00> : vector<8x512xf32>
    %156 = tpu.matmul %154, %155, %cst_58 {dimension_numbers = #tpu.dot_dimension_numbers<[1], [0], [0], [1], [0, 0, 1, 1], [], []>} : vector<8x128xbf16>, vector<128x512xbf16>, vector<8x512xf32> -> vector<8x512xf32>
    %157 = arith.addf %153, %156 : vector<8x512xf32>
    %158 = math.tanh %157 : vector<8x512xf32>
    %159 = vector.extract_strided_slice %158 {offsets = [0, 0], sizes = [8, 384], strides = [1, 1]} : vector<8x512xf32> to vector<8x384xf32>
    %cst_59 = arith.constant 5.000000e-01 : f32
    %160 = vector.broadcast %cst_59 : f32 to vector<8x384xf32>
    %161 = arith.mulf %160, %159 : vector<8x384xf32>
    %cst_60 = arith.constant 5.000000e-01 : f32
    %162 = vector.broadcast %cst_60 : f32 to vector<8x384xf32>
    %163 = arith.addf %161, %162 : vector<8x384xf32>
    %164 = vector.extract_strided_slice %163 {offsets = [0, 0], sizes = [8, 128], strides = [1, 1]} : vector<8x384xf32> to vector<8x128xf32>
    %165 = vector.extract_strided_slice %163 {offsets = [0, 128], sizes = [8, 128], strides = [1, 1]} : vector<8x384xf32> to vector<8x128xf32>
    %166 = vector.extract_strided_slice %163 {offsets = [0, 256], sizes = [8, 128], strides = [1, 1]} : vector<8x384xf32> to vector<8x128xf32>
    %167 = vector.extract_strided_slice %158 {offsets = [0, 384], sizes = [8, 128], strides = [1, 1]} : vector<8x512xf32> to vector<8x128xf32>
    %168 = arith.mulf %165, %147 : vector<8x128xf32>
    %169 = arith.mulf %164, %167 : vector<8x128xf32>
    %170 = arith.addf %168, %169 : vector<8x128xf32>
    %171 = math.tanh %170 : vector<8x128xf32>
    %172 = arith.mulf %166, %171 : vector<8x128xf32>
    %c7_i32 = arith.constant 7 : i32
    %c8_i32_61 = arith.constant 8 : i32
    %173 = arith.muli %c7_i32, %c8_i32_61 : i32
    %174 = tpu.assume_multiple %173, 8 : i32
    %175 = arith.index_cast %174 : i32 to index
    %c0_62 = arith.constant 0 : index
    %176 = vector.load %arg8[%175, %c0_62] : memref<64x512xf32, #tpu.memory_space<vmem>>, vector<8x512xf32>
    %177 = arith.truncf %172 : vector<8x128xf32> to vector<8x128xbf16>
    %c0_63 = arith.constant 0 : index
    %c0_64 = arith.constant 0 : index
    %178 = vector.load %arg3[%c0_63, %c0_64] : memref<128x512xbf16, #tpu.memory_space<vmem>>, vector<128x512xbf16>
    %cst_65 = arith.constant dense<0.000000e+00> : vector<8x512xf32>
    %179 = tpu.matmul %177, %178, %cst_65 {dimension_numbers = #tpu.dot_dimension_numbers<[1], [0], [0], [1], [0, 0, 1, 1], [], []>} : vector<8x128xbf16>, vector<128x512xbf16>, vector<8x512xf32> -> vector<8x512xf32>
    %180 = arith.addf %176, %179 : vector<8x512xf32>
    %181 = math.tanh %180 : vector<8x512xf32>
    %182 = vector.extract_strided_slice %181 {offsets = [0, 0], sizes = [8, 384], strides = [1, 1]} : vector<8x512xf32> to vector<8x384xf32>
    %cst_66 = arith.constant 5.000000e-01 : f32
    %183 = vector.broadcast %cst_66 : f32 to vector<8x384xf32>
    %184 = arith.mulf %183, %182 : vector<8x384xf32>
    %cst_67 = arith.constant 5.000000e-01 : f32
    %185 = vector.broadcast %cst_67 : f32 to vector<8x384xf32>
    %186 = arith.addf %184, %185 : vector<8x384xf32>
    %187 = vector.extract_strided_slice %186 {offsets = [0, 0], sizes = [8, 128], strides = [1, 1]} : vector<8x384xf32> to vector<8x128xf32>
    %188 = vector.extract_strided_slice %186 {offsets = [0, 128], sizes = [8, 128], strides = [1, 1]} : vector<8x384xf32> to vector<8x128xf32>
    %189 = vector.extract_strided_slice %186 {offsets = [0, 256], sizes = [8, 128], strides = [1, 1]} : vector<8x384xf32> to vector<8x128xf32>
    %190 = vector.extract_strided_slice %181 {offsets = [0, 384], sizes = [8, 128], strides = [1, 1]} : vector<8x512xf32> to vector<8x128xf32>
    %191 = arith.mulf %188, %170 : vector<8x128xf32>
    %192 = arith.mulf %187, %190 : vector<8x128xf32>
    %193 = arith.addf %191, %192 : vector<8x128xf32>
    %194 = math.tanh %193 : vector<8x128xf32>
    %195 = arith.mulf %189, %194 : vector<8x128xf32>
    %c8_i32_68 = arith.constant 8 : i32
    %c0_69 = arith.constant 0 : index
    %c0_70 = arith.constant 0 : index
    %196 = vector.load %arg6[%c0_69, %c0_70] : memref<8x128xf32, #tpu.memory_space<vmem>>, vector<8x128xf32>
    tpu.vector_store %arg6[%c0_69, %c0_70], %195 {strides = array<i32>} : memref<8x128xf32, #tpu.memory_space<vmem>>, vector<8x128xf32>,
    %c0_71 = arith.constant 0 : index
    %c0_72 = arith.constant 0 : index
    %197 = vector.load %arg7[%c0_71, %c0_72] : memref<8x128xf32, #tpu.memory_space<vmem>>, vector<8x128xf32>
    tpu.vector_store %arg7[%c0_71, %c0_72], %193 {strides = array<i32>} : memref<8x128xf32, #tpu.memory_space<vmem>>, vector<8x128xf32>,
    %c0_i32_73 = arith.constant 0 : i32
    %198 = arith.cmpi eq, %arg0, %c0_i32_73 : i32
    %199 = arith.extui %198 : i1 to i32
    %c0_i32_74 = arith.constant 0 : i32
    %200 = arith.cmpi ne, %199, %c0_i32_74 : i32
    scf.if %200 {
      %c0_75 = arith.constant 0 : index
      %c0_76 = arith.constant 0 : index
      %201 = vector.load %arg5[%c0_75, %c0_76] : memref<8x128xf32, #tpu.memory_space<vmem>>, vector<8x128xf32>
      tpu.vector_store %arg5[%c0_75, %c0_76], %195 {strides = array<i32>} : memref<8x128xf32, #tpu.memory_space<vmem>>, vector<8x128xf32>,
    } else {
    }
    return
  }
  func.func @transform_0(%arg0: i32) -> (i32, i32) {
    %c0_i32 = arith.constant 0 : i32
    %c0_i32_0 = arith.constant 0 : i32
    return %arg0, %c0_i32 : i32, i32
  }
  func.func @transform_1(%arg0: i32) -> (i32, i32) {
    %c0_i32 = arith.constant 0 : i32
    %c0_i32_0 = arith.constant 0 : i32
    %c0_i32_1 = arith.constant 0 : i32
    return %c0_i32, %c0_i32_0 : i32, i32
  }
  func.func @transform_2(%arg0: i32) -> (i32, i32) {
    %c0_i32 = arith.constant 0 : i32
    %c0_i32_0 = arith.constant 0 : i32
    %c0_i32_1 = arith.constant 0 : i32
    return %c0_i32, %c0_i32_0 : i32, i32
  }
  func.func @transform_3(%arg0: i32) -> (i32, i32) {
    %c0_i32 = arith.constant 0 : i32
    %c0_i32_0 = arith.constant 0 : i32
    %c0_i32_1 = arith.constant 0 : i32
    return %c0_i32, %c0_i32_0 : i32, i32
  }
  func.func @transform_4(%arg0: i32) -> (i32, i32) {
    %c0_i32 = arith.constant 0 : i32
    %c0_i32_0 = arith.constant 0 : i32
    %c0_i32_1 = arith.constant 0 : i32
    return %c0_i32, %c0_i32_0 : i32, i32
  }
}

</mosaic_0001>

<bundles_post_ra>
// kernel: tpu_custom_call.1
= control target key start
LH: loop header
LB: loop body
LE: loop exit
PB: predicated region body
PF: predicated region fallthrough
CT: control target
= control target key end

     0   :  { %9 = vsyncpa [#allocation6], 0  ;;  %s2531_s0 = inlined_call_operand.hbm [shape: bf16[64,128], index: 0, kind: input, shape index: {}]   ;;  %s2532_s1 = inlined_call_operand.hbm [shape: bf16[128,512], index: 1, kind: input, shape index: {}]   ;;  %s2533_s2 = inlined_call_operand.hbm [shape: bf16[128,512], index: 2, kind: input, shape index: {}]   ;;  %s2534_s3 = inlined_call_operand.vmem [shape: f32[1,512], index: 3, kind: input, shape index: {}]   ;;  %s2535_s4 = inlined_call_operand.hbm [shape: f32[8,128], index: 4, kind: output, shape index: {}]  }
   0x1   :  { %10 = vsyncpa [#allocation9], 0 }
   0x2   :  { %11 = vsyncpa [#allocation7], 0  ;;  %s1969_s15 = smov [#allocation8]   ;;  %s1875_s19 = scalar_lea.hbm %s2532_s1, 4096 }
   0x3   :  { %s29_s16 = sshll.u32 %s1969_s15, 4  ;;  %p1876_p0 = scmp.ne.s32.totalorder %s2532_s1, %s1875_s19  ;;  %s30_s16 = int_to_ptr.vmem [resolvable:$true] %s29_s16 }
   0x4   :  { %p1879_p1 = scmp.lt.u32.totalorder %s1875_s19, %s2532_s1 }
   0x6   :  { %p1881_p2 = pnand %p1879_p1, %p1876_p0 }
   0x8   :  { %1884 = shalt.err (!%p1881_p2)
}
   0x9   :  { %s1885_s24 = scalar_lea.vmem %s30_s16, 4096  ;;  %p1890_p4 = scmp.lt.s32.totalorder %s30_s16, %s30_s16 }
   0xa   :  { %p1886_p3 = scmp.ne.s32.totalorder %s30_s16, %s1885_s24  ;;  %p1891_p5 = scmp.lt.s32.totalorder %s1885_s24, %s1885_s24 }
   0xc   :  { %p1892_p6 = por %p1891_p5, %p1890_p4 }
   0xe   :  { %p1893_p7 = pnand %p1892_p6, %p1886_p3 }
  0x10   :  { %1896 = shalt.err (!%p1893_p7)
}
  0x11   :  { %s1970_s25 = smov 256   ;;  %s1971_s26 = smov 16  }
  0x12   :  { %35 = dma.hbm_to_vmem [thread:$0]  %s2532_s1, 4096, %s30_s16, [#allocation9], %s1970_s25, %s1970_s25, %s1971_s26  }
  0x13   :  { %s1972_s29 = smov [#allocation5]   ;;  %s1897_s7 = scalar_lea.hbm %s2531_s0, 512 }
  0x14   :  { %s17_s30 = sshll.u32 %s1972_s29, 4  ;;  %p1898_p8 = scmp.ne.s32.totalorder %s2531_s0, %s1897_s7  ;;  %s18_s30 = int_to_ptr.vmem [resolvable:$true] %s17_s30 }
  0x15   :  { %p1901_p9 = scmp.lt.u32.totalorder %s1897_s7, %s2531_s0 }
  0x17   :  { %p1903_p10 = pnand %p1901_p9, %p1898_p8 }
  0x19   :  { %1906 = shalt.err (!%p1903_p10)
}
  0x1a   :  { %s1907_s12 = scalar_lea.vmem %s18_s30, 512  ;;  %p1912_p12 = scmp.lt.s32.totalorder %s18_s30, %s18_s30 }
  0x1b   :  { %p1908_p11 = scmp.ne.s32.totalorder %s18_s30, %s1907_s12  ;;  %p1913_p13 = scmp.lt.s32.totalorder %s1907_s12, %s1907_s12 }
  0x1d   :  { %p1914_p0 = por %p1913_p13, %p1912_p12 }
  0x1f   :  { %p1915_p1 = pnand %p1914_p0, %p1908_p11 }
  0x21   :  { %1918 = shalt.err (!%p1915_p1)
}
  0x22   :  { %s1973_s1 = smov 64   ;;  %s1974_s13 = smov 4  }
  0x23   :  { %23 = dma.hbm_to_vmem [thread:$0]  %s2531_s0, 512, %s18_s30, [#allocation6], %s1973_s1, %s1973_s1, %s1974_s13  }
  0x24   :  { %s1975_s16 = smov [#allocation10]   ;;  %s1919_s20 = scalar_lea.hbm %s2533_s2, 4096 }
  0x25   :  { %s41_s17 = sshll.u32 %s1975_s16, 4  ;;  %p1920_p2 = scmp.ne.s32.totalorder %s2533_s2, %s1919_s20  ;;  %s42_s17 = int_to_ptr.vmem [resolvable:$true] %s41_s17 }
  0x26   :  { %p1923_p3 = scmp.lt.u32.totalorder %s1919_s20, %s2533_s2 }
  0x28   :  { %p1925_p4 = pnand %p1923_p3, %p1920_p2 }
  0x2a   :  { %1928 = shalt.err (!%p1925_p4)
}
  0x2b   :  { %s1929_s27 = scalar_lea.vmem %s42_s17, 4096  ;;  %p1934_p6 = scmp.lt.s32.totalorder %s42_s17, %s42_s17 }
  0x2c   :  { %p1930_p5 = scmp.ne.s32.totalorder %s42_s17, %s1929_s27  ;;  %p1935_p7 = scmp.lt.s32.totalorder %s1929_s27, %s1929_s27 }
  0x2e   :  { %p1936_p8 = por %p1935_p7, %p1934_p6 }
  0x30   :  { %p1937_p9 = pnand %p1936_p8, %p1930_p5 }
  0x32   :  { %1940 = shalt.err (!%p1937_p9)
}
  0x33   :  { %47 = dma.hbm_to_vmem [thread:$0]  %s2533_s2, 4096, %s42_s17, [#allocation9], %s1970_s25, %s1970_s25, %s1971_s26  }
  0x34   :  { %1963 = dma.done.wait [#allocation6], 512  }
  0x35   :  { %1964 = vsyncadd [#allocation6], 4294966784 }
  0x36   :  { %1965 = dma.done.wait [#allocation9], 8192  }
  0x37   :  { %1966 = vsyncadd [#allocation9], 4294959104  ;;  %v2536_v0 = vmov 0   ;;  %v1663_v1 = vld [vmem:[#allocation8 + $0x4] ss:$16 sps:$4 sm:$0xff]   ;;  %v1724_v44 = vld [vmem:[#allocation5 + $0x8] sm:$0xff]  }
  0x38   :  { %344 = vmatprep.mubr.bf16.mxu0 %v2536_v0  ;;  %417 = vmatprep.mubr.bf16.mxu1 %v2536_v0  ;;  %v1665_v2 = vld [vmem:[#allocation8 + $0xc] ss:$16 sps:$4 sm:$0xff]   ;;  %v1667_v3 = vld [vmem:[#allocation8] ss:$16 sps:$4 sm:$0xff]   ;;  %v1668_v4 = vld [vmem:[#allocation8 + $0x8] ss:$16 sps:$4 sm:$0xff]  }
  0x39   :  { %312 = vmatprep.subr.bf16.mxu0 %v1663_v1  ;;  %385 = vmatprep.subr.bf16.mxu1 %v1665_v2  ;;  %v1669_v5 = vld [vmem:[#allocation8 + $0x24] ss:$16 sps:$4 sm:$0xff]   ;;  %v1671_v6 = vld [vmem:[#allocation8 + $0x2c] ss:$16 sps:$4 sm:$0xff]   ;;  %v1673_v7 = vld [vmem:[#allocation8 + $0x20] ss:$16 sps:$4 sm:$0xff]  }
  0x3a   :  { %313 = vmatpush1.bf16.msra.mxu0 %v1667_v3  ;;  %386 = vmatpush1.bf16.msra.mxu1 %v1668_v4  ;;  %v1674_v8 = vld [vmem:[#allocation8 + $0x28] ss:$16 sps:$4 sm:$0xff]   ;;  %v1675_v9 = vld [vmem:[#allocation8 + $0x44] ss:$16 sps:$4 sm:$0xff]   ;;  %v1677_v10 = vld [vmem:[#allocation8 + $0x4c] ss:$16 sps:$4 sm:$0xff]  }
  0x3b   :  { %314 = vmatprep.subr.bf16.mxu0 %v1669_v5  ;;  %387 = vmatprep.subr.bf16.mxu1 %v1671_v6  ;;  %v1679_v11 = vld [vmem:[#allocation8 + $0x40] ss:$16 sps:$4 sm:$0xff]   ;;  %v1680_v12 = vld [vmem:[#allocation8 + $0x48] ss:$16 sps:$4 sm:$0xff]   ;;  %v1681_v13 = vld [vmem:[#allocation8 + $0x64] ss:$16 sps:$4 sm:$0xff]  }
  0x3c   :  { %v1683_v14 = vld [vmem:[#allocation8 + $0x6c] ss:$16 sps:$4 sm:$0xff]   ;;  %v1685_v15 = vld [vmem:[#allocation8 + $0x60] ss:$16 sps:$4 sm:$0xff]   ;;  %v1686_v16 = vld [vmem:[#allocation8 + $0x68] ss:$16 sps:$4 sm:$0xff]  }
  0x3d   :  { %v1687_v17 = vld [vmem:[#allocation8 + $0x84] ss:$16 sps:$4 sm:$0xff]   ;;  %v1689_v18 = vld [vmem:[#allocation8 + $0x8c] ss:$16 sps:$4 sm:$0xff]   ;;  %v1691_v19 = vld [vmem:[#allocation8 + $0x80] ss:$16 sps:$4 sm:$0xff]  }
  0x3e   :  { %315 = vmatpush1.bf16.msra.mxu0 %v1673_v7  ;;  %388 = vmatpush1.bf16.msra.mxu1 %v1674_v8  ;;  %v1692_v20 = vld [vmem:[#allocation8 + $0x88] ss:$16 sps:$4 sm:$0xff]   ;;  %v1693_v21 = vld [vmem:[#allocation8 + $0xa4] ss:$16 sps:$4 sm:$0xff]   ;;  %v1695_v22 = vld [vmem:[#allocation8 + $0xac] ss:$16 sps:$4 sm:$0xff]   ;;  %v108_v7 = vlaneseq }
  0x3f   :  { %316 = vmatprep.subr.bf16.mxu0 %v1675_v9  ;;  %389 = vmatprep.subr.bf16.mxu1 %v1677_v10  ;;  %v1697_v23 = vld [vmem:[#allocation8 + $0xa0] ss:$16 sps:$4 sm:$0xff]   ;;  %v1698_v24 = vld [vmem:[#allocation8 + $0xa8] ss:$16 sps:$4 sm:$0xff]   ;;  %v1699_v25 = vld [vmem:[#allocation8 + $0xc4] ss:$16 sps:$4 sm:$0xff]  }
  0x40   :  { %v1701_v26 = vld [vmem:[#allocation8 + $0xcc] ss:$16 sps:$4 sm:$0xff]   ;;  %v1703_v27 = vld [vmem:[#allocation8 + $0xc0] ss:$16 sps:$4 sm:$0xff]   ;;  %v1704_v28 = vld [vmem:[#allocation8 + $0xc8] ss:$16 sps:$4 sm:$0xff]  }
  0x41   :  { %v1705_v29 = vld [vmem:[#allocation8 + $0xe4] ss:$16 sps:$4 sm:$0xff]   ;;  %v1707_v30 = vld [vmem:[#allocation8 + $0xec] ss:$16 sps:$4 sm:$0xff]   ;;  %v1709_v31 = vld [vmem:[#allocation8 + $0xe0] ss:$16 sps:$4 sm:$0xff]  }
  0x42   :  { %317 = vmatpush1.bf16.msra.mxu0 %v1679_v11  ;;  %390 = vmatpush1.bf16.msra.mxu1 %v1680_v12  ;;  %v1710_v32 = vld [vmem:[#allocation8 + $0xe8] ss:$16 sps:$4 sm:$0xff]   ;;  %v2048_v33 = vld [vmem:[#allocation10 + $0x4] ss:$16 sps:$4 sm:$0xff]   ;;  %v2050_v34 = vld [vmem:[#allocation10 + $0xc] ss:$16 sps:$4 sm:$0xff]  }
  0x43   :  { %318 = vmatprep.subr.bf16.mxu0 %v1681_v13  ;;  %391 = vmatprep.subr.bf16.mxu1 %v1683_v14  ;;  %v1711_v35 = vld [vmem:[#allocation5] sm:$0xff]   ;;  %v2054_v37 = vld [vmem:[#allocation10 + $0x8] ss:$16 sps:$4 sm:$0xff]   ;;  %v2060_v39 = vld [vmem:[#allocation10 + $0x2c] ss:$16 sps:$4 sm:$0xff]   ;;  %v1977_v6 = vmov 0.0|0.0  }
  0x44   :  { %v2052_v36 = vld [vmem:[#allocation10] ss:$16 sps:$4 sm:$0xff]   ;;  %v2058_v38 = vld [vmem:[#allocation10 + $0x24] ss:$16 sps:$4 sm:$0xff]   ;;  %v2066_v41 = vld [vmem:[#allocation10 + $0x28] ss:$16 sps:$4 sm:$0xff]  }
  0x45   :  { %v2062_v40 = vld [vmem:[#allocation10 + $0x20] ss:$16 sps:$4 sm:$0xff]   ;;  %v2070_v42 = vld [vmem:[#allocation10 + $0x44] ss:$16 sps:$4 sm:$0xff]   ;;  %v2072_v43 = vld [vmem:[#allocation10 + $0x4c] ss:$16 sps:$4 sm:$0xff]  }
  0x46   :  { %319 = vmatpush1.bf16.msra.mxu0 %v1685_v15  ;;  %392 = vmatpush1.bf16.msra.mxu1 %v1686_v16  ;;  %v2076_v45 = vld [vmem:[#allocation10 + $0x40] ss:$16 sps:$4 sm:$0xff]   ;;  %v2078_v46 = vld [vmem:[#allocation10 + $0x48] ss:$16 sps:$4 sm:$0xff]   ;;  %v2082_v47 = vld [vmem:[#allocation10 + $0x64] ss:$16 sps:$4 sm:$0xff]  }
  0x47   :  { %320 = vmatprep.subr.bf16.mxu0 %v1687_v17  ;;  %393 = vmatprep.subr.bf16.mxu1 %v1689_v18  ;;  %v2086_v48 = vld [vmem:[#allocation10 + $0x6c] ss:$16 sps:$4 sm:$0xff]   ;;  %v2088_v49 = vld [vmem:[#allocation10 + $0x60] ss:$16 sps:$4 sm:$0xff]   ;;  %v2090_v50 = vld [vmem:[#allocation10 + $0x68] ss:$16 sps:$4 sm:$0xff]  }
  0x48   :  { %v2094_v51 = vld [vmem:[#allocation10 + $0x84] ss:$16 sps:$4 sm:$0xff]   ;;  %v2098_v52 = vld [vmem:[#allocation10 + $0x8c] ss:$16 sps:$4 sm:$0xff]   ;;  %v2104_v54 = vld [vmem:[#allocation10 + $0x80] ss:$16 sps:$4 sm:$0xff]  }
  0x49   :  { %v1737_v53 = vld [vmem:[#allocation5 + $0x10] sm:$0xff]   ;;  %v2106_v55 = vld [vmem:[#allocation10 + $0x88] ss:$16 sps:$4 sm:$0xff]   ;;  %v2112_v57 = vld [vmem:[#allocation10 + $0xac] ss:$16 sps:$4 sm:$0xff]   ;;  %v109_v8 = vshrl.u32 %v108_v7, 7 }
  0x4a   :  { %321 = vmatpush1.bf16.msra.mxu0 %v1691_v19  ;;  %394 = vmatpush1.bf16.msra.mxu1 %v1692_v20  ;;  %v2110_v56 = vld [vmem:[#allocation10 + $0xa4] ss:$16 sps:$4 sm:$0xff]   ;;  %v2116_v58 = vld [vmem:[#allocation10 + $0xa0] ss:$16 sps:$4 sm:$0xff]   ;;  %v2118_v59 = vld [vmem:[#allocation10 + $0xa8] ss:$16 sps:$4 sm:$0xff]  }
  0x4b   :  { %322 = vmatprep.subr.bf16.mxu0 %v1693_v21  ;;  %395 = vmatprep.subr.bf16.mxu1 %v1695_v22  ;;  %v2122_v60 = vld [vmem:[#allocation10 + $0xc4] ss:$16 sps:$4 sm:$0xff]   ;;  %v2124_v61 = vld [vmem:[#allocation10 + $0xcc] ss:$16 sps:$4 sm:$0xff]   ;;  %v2130_v63 = vld [vmem:[#allocation10 + $0xc0] ss:$16 sps:$4 sm:$0xff]  }
  0x4c   :  { %v1750_v62 = vld [vmem:[#allocation5 + $0x18] sm:$0xff]   ;;  %v2136_v2 = vld [vmem:[#allocation10 + $0xe4] ss:$16 sps:$4 sm:$0xff]   ;;  %v2142_v4 = vld [vmem:[#allocation10 + $0xe0] ss:$16 sps:$4 sm:$0xff]   ;;  %v118_v9 = vsub.s32 2, %v109_v8 }
  0x4d   :  { %v2132_v1 = vld [vmem:[#allocation10 + $0xc8] ss:$16 sps:$4 sm:$0xff]   ;;  %v2138_v3 = vld [vmem:[#allocation10 + $0xec] ss:$16 sps:$4 sm:$0xff]   ;;  %v122_v10 = vsub.s32 3, %v109_v8  ;;  %v110_v11 = vsub.s32 0, %v109_v8 }
  0x4e   :  { %323 = vmatpush1.bf16.msra.mxu0 %v1697_v23  ;;  %396 = vmatpush1.bf16.msra.mxu1 %v1698_v24  ;;  %v2144_v5 = vld [vmem:[#allocation10 + $0xe8] ss:$16 sps:$4 sm:$0xff]   ;;  %v106_v12 = vld [vmem:[%s2534_s3] sm:$0xf]  ;;  %v114_v13 = vsub.s32 1, %v109_v8  ;;  %s1978_s3 = smov [#allocation11]  }
  0x4f   :  { %324 = vmatprep.subr.bf16.mxu0 %v1699_v25  ;;  %397 = vmatprep.subr.bf16.mxu1 %v1701_v26  ;;  %v2191_v14 = vrot.slane %v106_v12, %v118_v9  ;;  %v2197_v17 = vrot.slane %v106_v12, %v122_v10  ;;  %v111_v18 = vrot.slane %v106_v12, %v110_v11  ;;  %s1568_s26 = sshll.u32 %s1978_s3, 4  ;;  %s1569_s26 = int_to_ptr.vmem [resolvable:$true] %s1568_s26 }
  0x50   :  { %v115_v21 = vrot.slane %v106_v12, %v114_v13  ;;  %s1941_s29 = scalar_lea.vmem %s1569_s26, 128  ;;  %p1946_p11 = scmp.lt.s32.totalorder %s1569_s26, %s1569_s26 }
  0x51   :  { %p1942_p10 = scmp.ne.s32.totalorder %s1569_s26, %s1941_s29  ;;  %p1947_p12 = scmp.lt.s32.totalorder %s1941_s29, %s1941_s29 }
  0x52   :  { %325 = vmatpush1.bf16.msra.mxu0 %v1703_v27  ;;  %398 = vmatpush1.bf16.msra.mxu1 %v1704_v28 }
  0x53   :  { %326 = vmatprep.subr.bf16.mxu0 %v1705_v29  ;;  %399 = vmatprep.subr.bf16.mxu1 %v1707_v30  ;;  %p1948_p13 = por %p1947_p12, %p1946_p11 }
  0x55   :  { %p1949_p0 = pnand %p1948_p13, %p1942_p10 }
  0x56   :  { %327 = vmatpush1.bf16.msra.mxu0 %v1709_v31  ;;  %400 = vmatpush1.bf16.msra.mxu1 %v1710_v32 }
  0x57   :  { %692 = vmatprep.subr.bf16.mxu0 %v2048_v33  ;;  %733 = vmatprep.subr.bf16.mxu1 %v2050_v34 }
  0x59   :  { %345 = vmatmul.mubr.bf16.vlgmr.msra.gmra.mrb[0].mxu0 %v1711_v35  ;;  %418 = vmatmul.mubr.bf16.vlgmr.msra.gmra.mrb[0].mxu1 %v1711_v35 }
  0x5a   :  { %693 = vmatpush1.bf16.msra.mxu0 %v2052_v36  ;;  %734 = vmatpush1.bf16.msra.mxu1 %v2054_v37 }
  0x5b   :  { %694 = vmatprep.subr.bf16.mxu0 %v2058_v38  ;;  %735 = vmatprep.subr.bf16.mxu1 %v2060_v39 }
  0x5c   :  { %354 = vmatprep.mubr.bf16.mxu0 %v2536_v0  ;;  %427 = vmatprep.mubr.bf16.mxu1 %v2536_v0 }
  0x5e   :  { %695 = vmatpush1.bf16.msra.mxu0 %v2062_v40  ;;  %736 = vmatpush1.bf16.msra.mxu1 %v2066_v41 }
  0x5f   :  { %696 = vmatprep.subr.bf16.mxu0 %v2070_v42  ;;  %737 = vmatprep.subr.bf16.mxu1 %v2072_v43 }
  0x61   :  { %355 = vmatmul.mubr.bf16.gmra.mrb[4].mxu0 %v1724_v44  ;;  %428 = vmatmul.mubr.bf16.gmra.mrb[4].mxu1 %v1724_v44 }
  0x62   :  { %697 = vmatpush1.bf16.msra.mxu0 %v2076_v45  ;;  %738 = vmatpush1.bf16.msra.mxu1 %v2078_v46 }
  0x63   :  { %698 = vmatprep.subr.bf16.mxu0 %v2082_v47  ;;  %739 = vmatprep.subr.bf16.mxu1 %v2086_v48 }
  0x64   :  { %364 = vmatprep.mubr.bf16.mxu0 %v2536_v0  ;;  %437 = vmatprep.mubr.bf16.mxu1 %v2536_v0 }
  0x66   :  { %699 = vmatpush1.bf16.msra.mxu0 %v2088_v49  ;;  %740 = vmatpush1.bf16.msra.mxu1 %v2090_v50 }
  0x67   :  { %700 = vmatprep.subr.bf16.mxu0 %v2094_v51  ;;  %741 = vmatprep.subr.bf16.mxu1 %v2098_v52 }
  0x69   :  { %365 = vmatmul.mubr.bf16.gmra.mrb[8].mxu0 %v1737_v53  ;;  %438 = vmatmul.mubr.bf16.gmra.mrb[8].mxu1 %v1737_v53 }
  0x6a   :  { %701 = vmatpush1.bf16.msra.mxu0 %v2104_v54  ;;  %742 = vmatpush1.bf16.msra.mxu1 %v2106_v55 }
  0x6b   :  { %702 = vmatprep.subr.bf16.mxu0 %v2110_v56  ;;  %743 = vmatprep.subr.bf16.mxu1 %v2112_v57 }
  0x6c   :  { %374 = vmatprep.mubr.bf16.mxu0 %v2536_v0  ;;  %447 = vmatprep.mubr.bf16.mxu1 %v2536_v0 }
  0x6e   :  { %703 = vmatpush1.bf16.msra.mxu0 %v2116_v58  ;;  %744 = vmatpush1.bf16.msra.mxu1 %v2118_v59 }
  0x6f   :  { %704 = vmatprep.subr.bf16.mxu0 %v2122_v60  ;;  %745 = vmatprep.subr.bf16.mxu1 %v2124_v61 }
  0x71   :  { %375 = vmatmul.mubr.bf16.gmra.mrb[12].mxu0 %v1750_v62  ;;  %448 = vmatmul.mubr.bf16.gmra.mrb[12].mxu1 %v1750_v62 }
  0x72   :  { %705 = vmatpush1.bf16.msra.mxu0 %v2130_v63  ;;  %746 = vmatpush1.bf16.msra.mxu1 %v2132_v1 }
  0x73   :  { %706 = vmatprep.subr.bf16.mxu0 %v2136_v2  ;;  %747 = vmatprep.subr.bf16.mxu1 %v2138_v3 }
  0x74   :  { %724 = vmatprep.mubr.bf16.mxu0 %v2536_v0  ;;  %765 = vmatprep.mubr.bf16.mxu1 %v2536_v0 }
  0x76   :  { %707 = vmatpush1.bf16.msra.mxu0 %v2142_v4  ;;  %748 = vmatpush1.bf16.msra.mxu1 %v2144_v5 }
  0x77   :  { %801 = vmatprep.subr.bf16.mxu0 %v2048_v33  ;;  %842 = vmatprep.subr.bf16.mxu1 %v2050_v34 }
  0x79   :  { %725 = vmatmul.mubr.bf16.vlgmr.msra.gmra.mrb[16].mxu0 %v1977_v6  ;;  %766 = vmatmul.mubr.bf16.vlgmr.msra.gmra.mrb[16].mxu1 %v1977_v6 }
  0x7a   :  { %802 = vmatpush1.bf16.msra.mxu0 %v2052_v36  ;;  %843 = vmatpush1.bf16.msra.mxu1 %v2054_v37 }
  0x7b   :  { %803 = vmatprep.subr.bf16.mxu0 %v2058_v38  ;;  %844 = vmatprep.subr.bf16.mxu1 %v2060_v39 }
  0x7c   :  { %833 = vmatprep.mubr.bf16.mxu0 %v2536_v0  ;;  %874 = vmatprep.mubr.bf16.mxu1 %v2536_v0 }
  0x7e   :  { %804 = vmatpush1.bf16.msra.mxu0 %v2062_v40  ;;  %845 = vmatpush1.bf16.msra.mxu1 %v2066_v41 }
  0x7f   :  { %805 = vmatprep.subr.bf16.mxu0 %v2070_v42  ;;  %846 = vmatprep.subr.bf16.mxu1 %v2072_v43 }
  0x82   :  { %806 = vmatpush1.bf16.msra.mxu0 %v2076_v45  ;;  %847 = vmatpush1.bf16.msra.mxu1 %v2078_v46 }
  0x83   :  { %807 = vmatprep.subr.bf16.mxu0 %v2082_v47  ;;  %848 = vmatprep.subr.bf16.mxu1 %v2086_v48 }
  0x86   :  { %808 = vmatpush1.bf16.msra.mxu0 %v2088_v49  ;;  %849 = vmatpush1.bf16.msra.mxu1 %v2090_v50 }
  0x87   :  { %809 = vmatprep.subr.bf16.mxu0 %v2094_v51  ;;  %850 = vmatprep.subr.bf16.mxu1 %v2098_v52 }
  0x8a   :  { %810 = vmatpush1.bf16.msra.mxu0 %v2104_v54  ;;  %851 = vmatpush1.bf16.msra.mxu1 %v2106_v55 }
  0x8b   :  { %811 = vmatprep.subr.bf16.mxu0 %v2110_v56  ;;  %852 = vmatprep.subr.bf16.mxu1 %v2112_v57 }
  0x8e   :  { %812 = vmatpush1.bf16.msra.mxu0 %v2116_v58  ;;  %853 = vmatpush1.bf16.msra.mxu1 %v2118_v59 }
  0x8f   :  { %813 = vmatprep.subr.bf16.mxu0 %v2122_v60  ;;  %854 = vmatprep.subr.bf16.mxu1 %v2124_v61 }
  0x92   :  { %814 = vmatpush1.bf16.msra.mxu0 %v2130_v63  ;;  %855 = vmatpush1.bf16.msra.mxu1 %v2132_v1 }
  0x93   :  { %815 = vmatprep.subr.bf16.mxu0 %v2136_v2  ;;  %856 = vmatprep.subr.bf16.mxu1 %v2138_v3 }
  0x96   :  { %816 = vmatpush1.bf16.msra.mxu0 %v2142_v4  ;;  %857 = vmatpush1.bf16.msra.mxu1 %v2144_v5 }
  0x97   :  { %910 = vmatprep.subr.bf16.mxu0 %v2048_v33  ;;  %951 = vmatprep.subr.bf16.mxu1 %v2050_v34 }
 0x12c   :  { %v2193_v15 = vpop.f32.mrb[0].mxu0  ;;  %v2195_v16 = vpop.f32.mrb[0].mxu1 }
 0x12d   :  { %v348_v19 = vpop.f32.mrb[1].mxu0  ;;  %v421_v20 = vpop.f32.mrb[1].mxu1 }
 0x12e   :  { %v350_v22 = vpop.f32.mrb[2].mxu0  ;;  %v423_v23 = vpop.f32.mrb[2].mxu1 }
 0x12f   :  { %v2199_v24 = vadd.f32 %v350_v22, %v111_v18  ;;  %v352_v25 = vpop.f32.mrb[3].mxu0  ;;  %v2202_v26 = vadd.f32 %v423_v23, %v2191_v14  ;;  %v425_v27 = vpop.f32.mrb[3].mxu1 }
 0x130   :  { %v2204_v28 = vadd.f32 %v352_v25, %v115_v21  ;;  %v2207_v29 = vadd.f32 %v425_v27, %v2197_v17 }
 0x134   :  { %v356_v30 = vpop.f32.mrb[4].mxu0  ;;  %v429_v31 = vpop.f32.mrb[4].mxu1 }
 0x135   :  { %v2209_v32 = vadd.f32 %v356_v30, %v111_v18  ;;  %v358_v35 = vpop.f32.mrb[5].mxu0  ;;  %v2212_v44 = vadd.f32 %v429_v31, %v2191_v14  ;;  %v431_v53 = vpop.f32.mrb[5].mxu1 }
 0x136   :  { %v2214_v62 = vadd.f32 %v358_v35, %v115_v21  ;;  %v360_v6 = vpop.f32.mrb[6].mxu0  ;;  %v2217_v7 = vadd.f32 %v431_v53, %v2197_v17  ;;  %v433_v8 = vpop.f32.mrb[6].mxu1 }
 0x137   :  { %v2219_v9 = vadd.f32 %v360_v6, %v111_v18  ;;  %v362_v10 = vpop.f32.mrb[7].mxu0  ;;  %v2222_v11 = vadd.f32 %v433_v8, %v2191_v14  ;;  %v435_v12 = vpop.f32.mrb[7].mxu1 }
 0x138   :  { %v2224_v13 = vadd.f32 %v362_v10, %v115_v21  ;;  %v2227_v22 = vadd.f32 %v435_v12, %v2197_v17 }
 0x139   :  { %2538 = vst [vmem:[#allocation15_spill] sm:$0xff] %v2219_v9  ;;  %2539 = vst [vmem:[#allocation16_spill] sm:$0xff] %v2222_v11 }
 0x13a   :  { %2540 = vst [vmem:[#allocation17_spill] sm:$0xff] %v2224_v13  ;;  %2541 = vst [vmem:[#allocation18_spill] sm:$0xff] %v2227_v22 }
 0x13c   :  { %v366_v23 = vpop.f32.mrb[8].mxu0  ;;  %v439_v25 = vpop.f32.mrb[8].mxu1 }
 0x13d   :  { %v2229_v27 = vadd.f32 %v366_v23, %v111_v18  ;;  %v368_v30 = vpop.f32.mrb[9].mxu0  ;;  %v2232_v31 = vadd.f32 %v439_v25, %v2191_v14  ;;  %v441_v35 = vpop.f32.mrb[9].mxu1 }
 0x13e   :  { %v2234_v53 = vadd.f32 %v368_v30, %v115_v21  ;;  %v370_v6 = vpop.f32.mrb[10].mxu0  ;;  %v2237_v8 = vadd.f32 %v441_v35, %v2197_v17  ;;  %v443_v10 = vpop.f32.mrb[10].mxu1 }
 0x13f   :  { %2542 = vst [vmem:[#allocation19_spill] sm:$0xff] %v2229_v27  ;;  %2543 = vst [vmem:[#allocation20_spill] sm:$0xff] %v2232_v31  ;;  %v2239_v0 = vadd.f32 %v370_v6, %v111_v18  ;;  %v372_v12 = vpop.f32.mrb[11].mxu0  ;;  %v2242_v22 = vadd.f32 %v443_v10, %v2191_v14  ;;  %v445_v23 = vpop.f32.mrb[11].mxu1 }
 0x140   :  { %2544 = vst [vmem:[#allocation21_spill] sm:$0xff] %v2234_v53  ;;  %2545 = vst [vmem:[#allocation22_spill] sm:$0xff] %v2237_v8  ;;  %v2244_v27 = vadd.f32 %v372_v12, %v115_v21  ;;  %v2247_v25 = vadd.f32 %v445_v23, %v2197_v17 }
 0x141   :  { %2546 = vst [vmem:[#allocation23_spill] sm:$0xff] %v2239_v0  ;;  %2547 = vst [vmem:[#allocation24_spill] sm:$0xff] %v2242_v22 }
 0x142   :  { %2548 = vst [vmem:[#allocation25_spill] sm:$0xff] %v2244_v27  ;;  %2549 = vst [vmem:[#allocation26_spill] sm:$0xff] %v2247_v25 }
 0x144   :  { %v376_v31 = vpop.f32.mrb[12].mxu0  ;;  %v449_v30 = vpop.f32.mrb[12].mxu1 }
 0x145   :  { %v2249_v53 = vadd.f32 %v376_v31, %v111_v18  ;;  %v378_v13 = vpop.f32.mrb[13].mxu0  ;;  %v2252_v35 = vadd.f32 %v449_v30, %v2191_v14  ;;  %v451_v6 = vpop.f32.mrb[13].mxu1 }
 0x146   :  { %v2254_v0 = vadd.f32 %v378_v13, %v115_v21  ;;  %v380_v8 = vpop.f32.mrb[14].mxu0  ;;  %v2257_v10 = vadd.f32 %v451_v6, %v2197_v17  ;;  %v453_v12 = vpop.f32.mrb[14].mxu1  ;;  %v347_v13 = vadd.f32 %v2193_v15, %v111_v18  ;;  %v349_v6 = vadd.f32 %v348_v19, %v115_v21 }
 0x147   :  { %2550 = vst [vmem:[#allocation27_spill] sm:$0xff] %v2249_v53  ;;  %2551 = vst [vmem:[#allocation28_spill] sm:$0xff] %v2252_v35  ;;  %v2259_v27 = vadd.f32 %v380_v8, %v111_v18  ;;  %v382_v23 = vpop.f32.mrb[15].mxu0  ;;  %v2262_v25 = vadd.f32 %v453_v12, %v2191_v14  ;;  %v455_v31 = vpop.f32.mrb[15].mxu1 }
 0x148   :  { %2552 = vst [vmem:[#allocation29_spill] sm:$0xff] %v2254_v0  ;;  %2553 = vst [vmem:[#allocation30_spill] sm:$0xff] %v2257_v10  ;;  %v2264_v53 = vadd.f32 %v382_v23, %v115_v21  ;;  %v2267_v30 = vadd.f32 %v455_v31, %v2197_v17  ;;  %v420_v0 = vadd.f32 %v2195_v16, %v2191_v14 }
 0x149   :  { %2554 = vst [vmem:[#allocation31_spill] sm:$0xff] %v2259_v27  ;;  %2555 = vst [vmem:[#allocation32_spill] sm:$0xff] %v2262_v25  ;;  %v422_v10 = vadd.f32 %v421_v20, %v2197_v17 }
 0x14a   :  { %2556 = vst [vmem:[#allocation33_spill] sm:$0xff] %v2264_v53  ;;  %2557 = vst [vmem:[#allocation34_spill] sm:$0xff] %v2267_v30 }
 0x14c   :  { %v726_v8 = vpop.f32.mrb[16].mxu0  ;;  %v767_v27 = vpop.f32.mrb[16].mxu1 }
 0x14d   :  { %v774_v35 = vadd.f32 %v726_v8, %v347_v13  ;;  %v776_v22 = vadd.f32 %v767_v27, %v420_v0  ;;  %v728_v12 = vpop.f32.mrb[17].mxu0  ;;  %v769_v25 = vpop.f32.mrb[17].mxu1 }
 0x14e   :  { %v775_v11 = vadd.f32 %v728_v12, %v349_v6  ;;  %v777_v23 = vadd.f32 %v769_v25, %v422_v10  ;;  %v730_v53 = vpop.f32.mrb[18].mxu0  ;;  %v771_v9 = vpop.f32.mrb[18].mxu1 }
 0x14f   :  { %1763 = vtanh.f32 %v774_v35  ;;  %v731_v31 = vpop.f32.mrb[19].mxu0  ;;  %v772_v30 = vpop.f32.mrb[19].mxu1 }
 0x150   :  { %1765 = vtanh.f32 %v775_v11 }
 0x151   :  { %1767 = vtanh.f32 %v777_v23 }
 0x152   :  { %1769 = vtanh.f32 %v776_v22  ;;  %v2558_v22 = vmov 0  }
 0x159   :  { %v1764_v15 = vpop.eup %1763 }
 0x15a   :  { %v782_v14 = vmul.f32 0.5, %v1764_v15  ;;  %v1766_v16 = vpop.eup %1765 }
 0x15b   :  { %v783_v17 = vmul.f32 0.5, %v1766_v16  ;;  %v1768_v19 = vpop.eup %1767 }
 0x15c   :  { %v785_v18 = vadd.f32 0.5, %v782_v14  ;;  %v1770_v9 = vpop.eup %1769 }
 0x15d   :  { %v786_v20 = vadd.f32 0.5, %v783_v17  ;;  %v784_v53 = vmul.f32 0.5, %v1770_v9 }
 0x15e   :  { %v789_v0 = vmul.f32 %v1768_v19, %v785_v18 }
 0x15f   :  { %v788_v21 = vmul.f32 0.0, %v786_v20  ;;  %v787_v25 = vadd.f32 0.5, %v784_v53 }
 0x161   :  { %v2273_v27 = vadd.f32 %v789_v0, %v788_v21 }
 0x163   :  { %1771 = vtanh.f32 %v2273_v27 }
 0x16d   :  { %v1772_v35 = vpop.eup %1771 }
 0x16e   :  { %v792_v11 = vmul.f32 %v1772_v35, %v787_v25 }
 0x170   :  { %v800_v10 = vpack.c.bf16 %v792_v11, %v792_v11 }
 0x172   :  { %834 = vmatmul.mubr.bf16.vlgmr.msra.gmra.mrb[20].mxu0 %v800_v10  ;;  %875 = vmatmul.mubr.bf16.vlgmr.msra.gmra.mrb[20].mxu1 %v800_v10 }
 0x173   :  { %911 = vmatpush1.bf16.msra.mxu0 %v2052_v36  ;;  %952 = vmatpush1.bf16.msra.mxu1 %v2054_v37 }
 0x174   :  { %912 = vmatprep.subr.bf16.mxu0 %v2058_v38  ;;  %953 = vmatprep.subr.bf16.mxu1 %v2060_v39 }
 0x175   :  { %942 = vmatprep.mubr.bf16.mxu0 %v2558_v22  ;;  %983 = vmatprep.mubr.bf16.mxu1 %v2558_v22 }
 0x177   :  { %913 = vmatpush1.bf16.msra.mxu0 %v2062_v40  ;;  %954 = vmatpush1.bf16.msra.mxu1 %v2066_v41 }
 0x178   :  { %914 = vmatprep.subr.bf16.mxu0 %v2070_v42  ;;  %955 = vmatprep.subr.bf16.mxu1 %v2072_v43 }
 0x17b   :  { %915 = vmatpush1.bf16.msra.mxu0 %v2076_v45  ;;  %956 = vmatpush1.bf16.msra.mxu1 %v2078_v46 }
 0x17c   :  { %916 = vmatprep.subr.bf16.mxu0 %v2082_v47  ;;  %957 = vmatprep.subr.bf16.mxu1 %v2086_v48 }
 0x17f   :  { %917 = vmatpush1.bf16.msra.mxu0 %v2088_v49  ;;  %958 = vmatpush1.bf16.msra.mxu1 %v2090_v50 }
 0x180   :  { %918 = vmatprep.subr.bf16.mxu0 %v2094_v51  ;;  %959 = vmatprep.subr.bf16.mxu1 %v2098_v52 }
 0x183   :  { %919 = vmatpush1.bf16.msra.mxu0 %v2104_v54  ;;  %960 = vmatpush1.bf16.msra.mxu1 %v2106_v55 }
 0x184   :  { %920 = vmatprep.subr.bf16.mxu0 %v2110_v56  ;;  %961 = vmatprep.subr.bf16.mxu1 %v2112_v57 }
 0x187   :  { %921 = vmatpush1.bf16.msra.mxu0 %v2116_v58  ;;  %962 = vmatpush1.bf16.msra.mxu1 %v2118_v59 }
 0x188   :  { %922 = vmatprep.subr.bf16.mxu0 %v2122_v60  ;;  %963 = vmatprep.subr.bf16.mxu1 %v2124_v61 }
 0x18b   :  { %923 = vmatpush1.bf16.msra.mxu0 %v2130_v63  ;;  %964 = vmatpush1.bf16.msra.mxu1 %v2132_v1 }
 0x18c   :  { %924 = vmatprep.subr.bf16.mxu0 %v2136_v2  ;;  %965 = vmatprep.subr.bf16.mxu1 %v2138_v3 }
 0x18f   :  { %925 = vmatpush1.bf16.msra.mxu0 %v2142_v4  ;;  %966 = vmatpush1.bf16.msra.mxu1 %v2144_v5 }
 0x190   :  { %1019 = vmatprep.subr.bf16.mxu0 %v2048_v33  ;;  %1060 = vmatprep.subr.bf16.mxu1 %v2050_v34 }
 0x245   :  { %v835_v30 = vpop.f32.mrb[20].mxu0  ;;  %v876_v13 = vpop.f32.mrb[20].mxu1 }
 0x246   :  { %v883_v6 = vadd.f32 %v835_v30, %v2199_v24  ;;  %v885_v8 = vadd.f32 %v876_v13, %v2202_v26  ;;  %v837_v12 = vpop.f32.mrb[21].mxu0  ;;  %v878_v23 = vpop.f32.mrb[21].mxu1 }
 0x247   :  { %v884_v31 = vadd.f32 %v837_v12, %v2204_v28  ;;  %v886_v15 = vadd.f32 %v878_v23, %v2207_v29  ;;  %v839_v14 = vpop.f32.mrb[22].mxu0  ;;  %v880_v16 = vpop.f32.mrb[22].mxu1 }
 0x248   :  { %1773 = vtanh.f32 %v883_v6  ;;  %v840_v18 = vpop.f32.mrb[23].mxu0  ;;  %v881_v17 = vpop.f32.mrb[23].mxu1 }
 0x249   :  { %1775 = vtanh.f32 %v884_v31 }
 0x24a   :  { %1777 = vtanh.f32 %v886_v15 }
 0x24b   :  { %1779 = vtanh.f32 %v885_v8 }
 0x252   :  { %v1774_v19 = vpop.eup %1773 }
 0x253   :  { %v891_v20 = vmul.f32 0.5, %v1774_v19  ;;  %v1776_v0 = vpop.eup %1775 }
 0x254   :  { %v892_v24 = vmul.f32 0.5, %v1776_v0  ;;  %v1778_v26 = vpop.eup %1777 }
 0x255   :  { %v894_v21 = vadd.f32 0.5, %v891_v20  ;;  %v1780_v29 = vpop.eup %1779 }
 0x256   :  { %v895_v9 = vadd.f32 0.5, %v892_v24  ;;  %v893_v35 = vmul.f32 0.5, %v1780_v29 }
 0x257   :  { %v898_v53 = vmul.f32 %v1778_v26, %v894_v21 }
 0x258   :  { %v897_v28 = vmul.f32 %v895_v9, %v2273_v27  ;;  %v896_v11 = vadd.f32 0.5, %v893_v35 }
 0x25a   :  { %v2315_v25 = vadd.f32 %v898_v53, %v897_v28 }
 0x25c   :  { %1781 = vtanh.f32 %v2315_v25 }
 0x266   :  { %v1782_v10 = vpop.eup %1781 }
 0x267   :  { %v901_v30 = vmul.f32 %v1782_v10, %v896_v11 }
 0x269   :  { %v909_v13 = vpack.c.bf16 %v901_v30, %v901_v30 }
 0x26b   :  { %943 = vmatmul.mubr.bf16.vlgmr.msra.gmra.mrb[24].mxu0 %v909_v13  ;;  %984 = vmatmul.mubr.bf16.vlgmr.msra.gmra.mrb[24].mxu1 %v909_v13  ;;  %v2559_v13 = vld [vmem:[#allocation15_spill] sm:$0xff] }
 0x26c   :  { %1020 = vmatpush1.bf16.msra.mxu0 %v2052_v36  ;;  %1061 = vmatpush1.bf16.msra.mxu1 %v2054_v37 }
 0x26d   :  { %1021 = vmatprep.subr.bf16.mxu0 %v2058_v38  ;;  %1062 = vmatprep.subr.bf16.mxu1 %v2060_v39 }
 0x26e   :  { %1051 = vmatprep.mubr.bf16.mxu0 %v2558_v22  ;;  %1092 = vmatprep.mubr.bf16.mxu1 %v2558_v22 }
 0x270   :  { %1022 = vmatpush1.bf16.msra.mxu0 %v2062_v40  ;;  %1063 = vmatpush1.bf16.msra.mxu1 %v2066_v41 }
 0x271   :  { %1023 = vmatprep.subr.bf16.mxu0 %v2070_v42  ;;  %1064 = vmatprep.subr.bf16.mxu1 %v2072_v43 }
 0x274   :  { %1024 = vmatpush1.bf16.msra.mxu0 %v2076_v45  ;;  %1065 = vmatpush1.bf16.msra.mxu1 %v2078_v46 }
 0x275   :  { %1025 = vmatprep.subr.bf16.mxu0 %v2082_v47  ;;  %1066 = vmatprep.subr.bf16.mxu1 %v2086_v48 }
 0x278   :  { %1026 = vmatpush1.bf16.msra.mxu0 %v2088_v49  ;;  %1067 = vmatpush1.bf16.msra.mxu1 %v2090_v50 }
 0x279   :  { %1027 = vmatprep.subr.bf16.mxu0 %v2094_v51  ;;  %1068 = vmatprep.subr.bf16.mxu1 %v2098_v52 }
 0x27c   :  { %1028 = vmatpush1.bf16.msra.mxu0 %v2104_v54  ;;  %1069 = vmatpush1.bf16.msra.mxu1 %v2106_v55 }
 0x27d   :  { %1029 = vmatprep.subr.bf16.mxu0 %v2110_v56  ;;  %1070 = vmatprep.subr.bf16.mxu1 %v2112_v57 }
 0x280   :  { %1030 = vmatpush1.bf16.msra.mxu0 %v2116_v58  ;;  %1071 = vmatpush1.bf16.msra.mxu1 %v2118_v59 }
 0x281   :  { %1031 = vmatprep.subr.bf16.mxu0 %v2122_v60  ;;  %1072 = vmatprep.subr.bf16.mxu1 %v2124_v61 }
 0x284   :  { %1032 = vmatpush1.bf16.msra.mxu0 %v2130_v63  ;;  %1073 = vmatpush1.bf16.msra.mxu1 %v2132_v1 }
 0x285   :  { %1033 = vmatprep.subr.bf16.mxu0 %v2136_v2  ;;  %1074 = vmatprep.subr.bf16.mxu1 %v2138_v3 }
 0x288   :  { %1034 = vmatpush1.bf16.msra.mxu0 %v2142_v4  ;;  %1075 = vmatpush1.bf16.msra.mxu1 %v2144_v5 }
 0x289   :  { %1128 = vmatprep.subr.bf16.mxu0 %v2048_v33  ;;  %1169 = vmatprep.subr.bf16.mxu1 %v2050_v34 }
 0x33e   :  { %v944_v27 = vpop.f32.mrb[24].mxu0  ;;  %v985_v6 = vpop.f32.mrb[24].mxu1 }
 0x33f   :  { %v992_v8 = vadd.f32 %v944_v27, %v2209_v32  ;;  %v994_v12 = vadd.f32 %v985_v6, %v2212_v44  ;;  %v946_v23 = vpop.f32.mrb[25].mxu0  ;;  %v987_v31 = vpop.f32.mrb[25].mxu1  ;;  %v2560_v6 = vld [vmem:[#allocation16_spill] sm:$0xff] }
 0x340   :  { %v993_v15 = vadd.f32 %v946_v23, %v2214_v62  ;;  %v995_v14 = vadd.f32 %v987_v31, %v2217_v7  ;;  %v948_v16 = vpop.f32.mrb[26].mxu0  ;;  %v989_v18 = vpop.f32.mrb[26].mxu1  ;;  %v2561_v31 = vld [vmem:[#allocation17_spill] sm:$0xff] }
 0x341   :  { %1783 = vtanh.f32 %v992_v8  ;;  %v949_v17 = vpop.f32.mrb[27].mxu0  ;;  %v990_v19 = vpop.f32.mrb[27].mxu1 }
 0x342   :  { %1785 = vtanh.f32 %v993_v15 }
 0x343   :  { %1787 = vtanh.f32 %v995_v14  ;;  %v2562_v14 = vld [vmem:[#allocation18_spill] sm:$0xff] }
 0x344   :  { %1789 = vtanh.f32 %v994_v12 }
 0x34b   :  { %v1784_v20 = vpop.eup %1783 }
 0x34c   :  { %v1000_v0 = vmul.f32 0.5, %v1784_v20  ;;  %v1786_v21 = vpop.eup %1785 }
 0x34d   :  { %v1001_v32 = vmul.f32 0.5, %v1786_v21  ;;  %v1788_v44 = vpop.eup %1787 }
 0x34e   :  { %v1003_v24 = vadd.f32 0.5, %v1000_v0  ;;  %v1790_v7 = vpop.eup %1789 }
 0x34f   :  { %v1004_v26 = vadd.f32 0.5, %v1001_v32  ;;  %v1002_v28 = vmul.f32 0.5, %v1790_v7 }
 0x350   :  { %v1007_v9 = vmul.f32 %v1788_v44, %v1003_v24 }
 0x351   :  { %v1006_v62 = vmul.f32 %v1004_v26, %v2315_v25  ;;  %v1005_v29 = vadd.f32 0.5, %v1002_v28 }
 0x353   :  { %v2357_v53 = vadd.f32 %v1007_v9, %v1006_v62 }
 0x355   :  { %1791 = vtanh.f32 %v2357_v53 }
 0x35f   :  { %v1792_v35 = vpop.eup %1791 }
 0x360   :  { %v1010_v11 = vmul.f32 %v1792_v35, %v1005_v29 }
 0x362   :  { %v1018_v10 = vpack.c.bf16 %v1010_v11, %v1010_v11 }
 0x364   :  { %1052 = vmatmul.mubr.bf16.vlgmr.msra.gmra.mrb[28].mxu0 %v1018_v10  ;;  %1093 = vmatmul.mubr.bf16.vlgmr.msra.gmra.mrb[28].mxu1 %v1018_v10 }
 0x365   :  { %1129 = vmatpush1.bf16.msra.mxu0 %v2052_v36  ;;  %1170 = vmatpush1.bf16.msra.mxu1 %v2054_v37 }
 0x366   :  { %1130 = vmatprep.subr.bf16.mxu0 %v2058_v38  ;;  %1171 = vmatprep.subr.bf16.mxu1 %v2060_v39 }
 0x367   :  { %1160 = vmatprep.mubr.bf16.mxu0 %v2558_v22  ;;  %1201 = vmatprep.mubr.bf16.mxu1 %v2558_v22 }
 0x369   :  { %1131 = vmatpush1.bf16.msra.mxu0 %v2062_v40  ;;  %1172 = vmatpush1.bf16.msra.mxu1 %v2066_v41 }
 0x36a   :  { %1132 = vmatprep.subr.bf16.mxu0 %v2070_v42  ;;  %1173 = vmatprep.subr.bf16.mxu1 %v2072_v43 }
 0x36d   :  { %1133 = vmatpush1.bf16.msra.mxu0 %v2076_v45  ;;  %1174 = vmatpush1.bf16.msra.mxu1 %v2078_v46 }
 0x36e   :  { %1134 = vmatprep.subr.bf16.mxu0 %v2082_v47  ;;  %1175 = vmatprep.subr.bf16.mxu1 %v2086_v48 }
 0x371   :  { %1135 = vmatpush1.bf16.msra.mxu0 %v2088_v49  ;;  %1176 = vmatpush1.bf16.msra.mxu1 %v2090_v50 }
 0x372   :  { %1136 = vmatprep.subr.bf16.mxu0 %v2094_v51  ;;  %1177 = vmatprep.subr.bf16.mxu1 %v2098_v52 }
 0x375   :  { %1137 = vmatpush1.bf16.msra.mxu0 %v2104_v54  ;;  %1178 = vmatpush1.bf16.msra.mxu1 %v2106_v55 }
 0x376   :  { %1138 = vmatprep.subr.bf16.mxu0 %v2110_v56  ;;  %1179 = vmatprep.subr.bf16.mxu1 %v2112_v57 }
 0x379   :  { %1139 = vmatpush1.bf16.msra.mxu0 %v2116_v58  ;;  %1180 = vmatpush1.bf16.msra.mxu1 %v2118_v59 }
 0x37a   :  { %1140 = vmatprep.subr.bf16.mxu0 %v2122_v60  ;;  %1181 = vmatprep.subr.bf16.mxu1 %v2124_v61 }
 0x37d   :  { %1141 = vmatpush1.bf16.msra.mxu0 %v2130_v63  ;;  %1182 = vmatpush1.bf16.msra.mxu1 %v2132_v1 }
 0x37e   :  { %1142 = vmatprep.subr.bf16.mxu0 %v2136_v2  ;;  %1183 = vmatprep.subr.bf16.mxu1 %v2138_v3 }
 0x381   :  { %1143 = vmatpush1.bf16.msra.mxu0 %v2142_v4  ;;  %1184 = vmatpush1.bf16.msra.mxu1 %v2144_v5 }
 0x382   :  { %1237 = vmatprep.subr.bf16.mxu0 %v2048_v33  ;;  %1278 = vmatprep.subr.bf16.mxu1 %v2050_v34 }
 0x437   :  { %v1053_v25 = vpop.f32.mrb[28].mxu0  ;;  %v1094_v30 = vpop.f32.mrb[28].mxu1 }
 0x438   :  { %v1101_v27 = vadd.f32 %v1053_v25, %v2559_v13  ;;  %v1103_v8 = vadd.f32 %v1094_v30, %v2560_v6  ;;  %v1055_v12 = vpop.f32.mrb[29].mxu0  ;;  %v1096_v23 = vpop.f32.mrb[29].mxu1 }
 0x439   :  { %v1102_v15 = vadd.f32 %v1055_v12, %v2561_v31  ;;  %v1104_v16 = vadd.f32 %v1096_v23, %v2562_v14  ;;  %v1057_v18 = vpop.f32.mrb[30].mxu0  ;;  %v1098_v17 = vpop.f32.mrb[30].mxu1 }
 0x43a   :  { %1793 = vtanh.f32 %v1101_v27  ;;  %v1058_v19 = vpop.f32.mrb[31].mxu0  ;;  %v1099_v20 = vpop.f32.mrb[31].mxu1  ;;  %v2566_v27 = vld [vmem:[#allocation22_spill] sm:$0xff] }
 0x43b   :  { %1795 = vtanh.f32 %v1102_v15 }
 0x43c   :  { %1797 = vtanh.f32 %v1104_v16 }
 0x43d   :  { %1799 = vtanh.f32 %v1103_v8 }
 0x444   :  { %v1794_v0 = vpop.eup %1793 }
 0x445   :  { %v1109_v21 = vmul.f32 0.5, %v1794_v0  ;;  %v1796_v24 = vpop.eup %1795 }
 0x446   :  { %v1110_v44 = vmul.f32 0.5, %v1796_v24  ;;  %v1798_v26 = vpop.eup %1797 }
 0x447   :  { %v1112_v32 = vadd.f32 0.5, %v1109_v21  ;;  %v1800_v29 = vpop.eup %1799 }
 0x448   :  { %v1113_v9 = vadd.f32 0.5, %v1110_v44  ;;  %v1111_v35 = vmul.f32 0.5, %v1800_v29  ;;  %v2453_v29 = vld [vmem:[#allocation10 + $0x2c] ss:$16 sps:$4 sm:$0xff]  }
 0x449   :  { %v1116_v62 = vmul.f32 %v1798_v26, %v1112_v32 }
 0x44a   :  { %v1115_v7 = vmul.f32 %v1113_v9, %v2357_v53  ;;  %v1114_v11 = vadd.f32 0.5, %v1111_v35  ;;  %v2565_v53 = vld [vmem:[#allocation21_spill] sm:$0xff]  ;;  %v2458_v35 = vld [vmem:[#allocation10 + $0x20] ss:$16 sps:$4 sm:$0xff]  }
 0x44c   :  { %v2399_v28 = vadd.f32 %v1116_v62, %v1115_v7  ;;  %v2444_v62 = vld [vmem:[#allocation10] ss:$16 sps:$4 sm:$0xff]   ;;  %v2447_v7 = vld [vmem:[#allocation10 + $0x8] ss:$16 sps:$4 sm:$0xff]  }
 0x44e   :  { %1801 = vtanh.f32 %v2399_v28 }
 0x458   :  { %v1802_v10 = vpop.eup %1801 }
 0x459   :  { %v1119_v25 = vmul.f32 %v1802_v10, %v1114_v11  ;;  %v2461_v11 = vld [vmem:[#allocation10 + $0x28] ss:$16 sps:$4 sm:$0xff]   ;;  %v2464_v10 = vld [vmem:[#allocation10 + $0x44] ss:$16 sps:$4 sm:$0xff]  }
 0x45b   :  { %v1127_v30 = vpack.c.bf16 %v1119_v25, %v1119_v25  ;;  %v2467_v25 = vld [vmem:[#allocation10 + $0x4c] ss:$16 sps:$4 sm:$0xff]  }
 0x45d   :  { %1161 = vmatmul.mubr.bf16.vlgmr.msra.gmra.mrb[32].mxu0 %v1127_v30  ;;  %1202 = vmatmul.mubr.bf16.vlgmr.msra.gmra.mrb[32].mxu1 %v1127_v30 }
 0x45e   :  { %1238 = vmatpush1.bf16.msra.mxu0 %v2052_v36  ;;  %1279 = vmatpush1.bf16.msra.mxu1 %v2054_v37 }
 0x45f   :  { %1239 = vmatprep.subr.bf16.mxu0 %v2058_v38  ;;  %1280 = vmatprep.subr.bf16.mxu1 %v2060_v39  ;;  %v2563_v38 = vld [vmem:[#allocation19_spill] sm:$0xff] }
 0x460   :  { %1269 = vmatprep.mubr.bf16.mxu0 %v2558_v22  ;;  %1310 = vmatprep.mubr.bf16.mxu1 %v2558_v22 }
 0x462   :  { %1240 = vmatpush1.bf16.msra.mxu0 %v2062_v40  ;;  %1281 = vmatpush1.bf16.msra.mxu1 %v2066_v41  ;;  %v2564_v40 = vld [vmem:[#allocation20_spill] sm:$0xff] }
 0x463   :  { %1241 = vmatprep.subr.bf16.mxu0 %v2070_v42  ;;  %1282 = vmatprep.subr.bf16.mxu1 %v2072_v43 }
 0x466   :  { %1242 = vmatpush1.bf16.msra.mxu0 %v2076_v45  ;;  %1283 = vmatpush1.bf16.msra.mxu1 %v2078_v46 }
 0x467   :  { %1243 = vmatprep.subr.bf16.mxu0 %v2082_v47  ;;  %1284 = vmatprep.subr.bf16.mxu1 %v2086_v48 }
 0x46a   :  { %1244 = vmatpush1.bf16.msra.mxu0 %v2088_v49  ;;  %1285 = vmatpush1.bf16.msra.mxu1 %v2090_v50 }
 0x46b   :  { %1245 = vmatprep.subr.bf16.mxu0 %v2094_v51  ;;  %1286 = vmatprep.subr.bf16.mxu1 %v2098_v52 }
 0x46e   :  { %1246 = vmatpush1.bf16.msra.mxu0 %v2104_v54  ;;  %1287 = vmatpush1.bf16.msra.mxu1 %v2106_v55 }
 0x46f   :  { %1247 = vmatprep.subr.bf16.mxu0 %v2110_v56  ;;  %1288 = vmatprep.subr.bf16.mxu1 %v2112_v57 }
 0x472   :  { %1248 = vmatpush1.bf16.msra.mxu0 %v2116_v58  ;;  %1289 = vmatpush1.bf16.msra.mxu1 %v2118_v59 }
 0x473   :  { %1249 = vmatprep.subr.bf16.mxu0 %v2122_v60  ;;  %1290 = vmatprep.subr.bf16.mxu1 %v2124_v61 }
 0x476   :  { %1250 = vmatpush1.bf16.msra.mxu0 %v2130_v63  ;;  %1291 = vmatpush1.bf16.msra.mxu1 %v2132_v1 }
 0x477   :  { %1251 = vmatprep.subr.bf16.mxu0 %v2136_v2  ;;  %1292 = vmatprep.subr.bf16.mxu1 %v2138_v3 }
 0x47a   :  { %1252 = vmatpush1.bf16.msra.mxu0 %v2142_v4  ;;  %1293 = vmatpush1.bf16.msra.mxu1 %v2144_v5 }
 0x47b   :  { %1346 = vmatprep.subr.bf16.mxu0 %v2048_v33  ;;  %1387 = vmatprep.subr.bf16.mxu1 %v2050_v34 }
 0x530   :  { %v1162_v36 = vpop.f32.mrb[32].mxu0  ;;  %v1203_v37 = vpop.f32.mrb[32].mxu1 }
 0x531   :  { %v1210_v39 = vadd.f32 %v1162_v36, %v2563_v38  ;;  %v1212_v41 = vadd.f32 %v1203_v37, %v2564_v40  ;;  %v1164_v42 = vpop.f32.mrb[33].mxu0  ;;  %v1205_v43 = vpop.f32.mrb[33].mxu1 }
 0x532   :  { %v1211_v13 = vadd.f32 %v1164_v42, %v2565_v53  ;;  %v1213_v6 = vadd.f32 %v1205_v43, %v2566_v27  ;;  %v1166_v8 = vpop.f32.mrb[34].mxu0  ;;  %v1207_v12 = vpop.f32.mrb[34].mxu1 }
 0x533   :  { %1803 = vtanh.f32 %v1210_v39  ;;  %v1167_v23 = vpop.f32.mrb[35].mxu0  ;;  %v1208_v31 = vpop.f32.mrb[35].mxu1  ;;  %v1854_v8 = vld [vmem:[#allocation10 + $0x48] ss:$16 sps:$4 sm:$0xff]   ;;  %v1855_v12 = vld [vmem:[#allocation10 + $0x64] ss:$16 sps:$4 sm:$0xff]  }
 0x534   :  { %1805 = vtanh.f32 %v1211_v13  ;;  %v1856_v23 = vld [vmem:[#allocation10 + $0x6c] ss:$16 sps:$4 sm:$0xff]   ;;  %v1857_v31 = vld [vmem:[#allocation10 + $0x60] ss:$16 sps:$4 sm:$0xff]  }
 0x535   :  { %1807 = vtanh.f32 %v1213_v6  ;;  %v1853_v6 = vld [vmem:[#allocation10 + $0x40] ss:$16 sps:$4 sm:$0xff]  }
 0x536   :  { %1809 = vtanh.f32 %v1212_v41 }
 0x53d   :  { %v1804_v33 = vpop.eup %1803 }
 0x53e   :  { %v1218_v34 = vmul.f32 0.5, %v1804_v33  ;;  %v1806_v15 = vpop.eup %1805  ;;  %v1858_v33 = vld [vmem:[#allocation10 + $0x68] ss:$16 sps:$4 sm:$0xff]  }
 0x53f   :  { %v1219_v16 = vmul.f32 0.5, %v1806_v15  ;;  %v1808_v18 = vpop.eup %1807  ;;  %v1861_v15 = vld [vmem:[#allocation10 + $0x80] ss:$16 sps:$4 sm:$0xff]  }
 0x540   :  { %v1221_v14 = vadd.f32 0.5, %v1218_v34  ;;  %v1810_v21 = vpop.eup %1809  ;;  %v1860_v34 = vld [vmem:[#allocation10 + $0x8c] ss:$16 sps:$4 sm:$0xff]  }
 0x541   :  { %v1222_v17 = vadd.f32 0.5, %v1219_v16  ;;  %v1220_v24 = vmul.f32 0.5, %v1810_v21  ;;  %v1863_v16 = vld [vmem:[#allocation10 + $0xa4] ss:$16 sps:$4 sm:$0xff]   ;;  %v1869_v21 = vld [vmem:[#allocation10 + $0xc0] ss:$16 sps:$4 sm:$0xff]  }
 0x542   :  { %v1225_v19 = vmul.f32 %v1808_v18, %v1221_v14  ;;  %v1862_v14 = vld [vmem:[#allocation10 + $0x88] ss:$16 sps:$4 sm:$0xff]   ;;  %v1864_v18 = vld [vmem:[#allocation10 + $0xac] ss:$16 sps:$4 sm:$0xff]  }
 0x543   :  { %v1224_v20 = vmul.f32 %v1222_v17, %v2399_v28  ;;  %v1223_v32 = vadd.f32 0.5, %v1220_v24  ;;  %v2450_v28 = vld [vmem:[#allocation10 + $0x24] ss:$16 sps:$4 sm:$0xff]   ;;  %v1865_v17 = vld [vmem:[#allocation10 + $0xa0] ss:$16 sps:$4 sm:$0xff]  }
 0x544   :  { %v1870_v24 = vld [vmem:[#allocation10 + $0xc8] ss:$16 sps:$4 sm:$0xff]  }
 0x545   :  { %v2441_v0 = vadd.f32 %v1225_v19, %v1224_v20  ;;  %v1866_v19 = vld [vmem:[#allocation10 + $0xa8] ss:$16 sps:$4 sm:$0xff]   ;;  %v1867_v20 = vld [vmem:[#allocation10 + $0xc4] ss:$16 sps:$4 sm:$0xff]  }
 0x547   :  { %1811 = vtanh.f32 %v2441_v0 }
 0x551   :  { %v1812_v44 = vpop.eup %1811 }
 0x552   :  { %v1228_v26 = vmul.f32 %v1812_v44, %v1223_v32  ;;  %v1871_v32 = vld [vmem:[#allocation10 + $0xe4] ss:$16 sps:$4 sm:$0xff]   ;;  %v1872_v44 = vld [vmem:[#allocation10 + $0xec] ss:$16 sps:$4 sm:$0xff]  }
 0x554   :  { %v1236_v9 = vpack.c.bf16 %v1228_v26, %v1228_v26  ;;  %v1873_v26 = vld [vmem:[#allocation10 + $0xe0] ss:$16 sps:$4 sm:$0xff]  }
 0x556   :  { %1270 = vmatmul.mubr.bf16.vlgmr.msra.gmra.mrb[36].mxu0 %v1236_v9  ;;  %1311 = vmatmul.mubr.bf16.vlgmr.msra.gmra.mrb[36].mxu1 %v1236_v9  ;;  %v1874_v9 = vld [vmem:[#allocation10 + $0xe8] ss:$16 sps:$4 sm:$0xff]  }
 0x557   :  { %1347 = vmatpush1.bf16.msra.mxu0 %v2444_v62  ;;  %1388 = vmatpush1.bf16.msra.mxu1 %v2447_v7 }
 0x558   :  { %1348 = vmatprep.subr.bf16.mxu0 %v2450_v28  ;;  %1389 = vmatprep.subr.bf16.mxu1 %v2453_v29 }
 0x559   :  { %1378 = vmatprep.mubr.bf16.mxu0 %v2558_v22  ;;  %1419 = vmatprep.mubr.bf16.mxu1 %v2558_v22 }
 0x55b   :  { %1349 = vmatpush1.bf16.msra.mxu0 %v2458_v35  ;;  %1390 = vmatpush1.bf16.msra.mxu1 %v2461_v11 }
 0x55c   :  { %1350 = vmatprep.subr.bf16.mxu0 %v2464_v10  ;;  %1391 = vmatprep.subr.bf16.mxu1 %v2467_v25 }
 0x55f   :  { %1351 = vmatpush1.bf16.msra.mxu0 %v2076_v45  ;;  %1392 = vmatpush1.bf16.msra.mxu1 %v2078_v46  ;;  %v1851_v45 = vld [vmem:[#allocation10 + $0x4] ss:$16 sps:$4 sm:$0xff]   ;;  %v1852_v46 = vld [vmem:[#allocation10 + $0xc] ss:$16 sps:$4 sm:$0xff]  }
 0x560   :  { %1352 = vmatprep.subr.bf16.mxu0 %v2082_v47  ;;  %1393 = vmatprep.subr.bf16.mxu1 %v2086_v48 }
 0x563   :  { %1353 = vmatpush1.bf16.msra.mxu0 %v2088_v49  ;;  %1394 = vmatpush1.bf16.msra.mxu1 %v2090_v50  ;;  %v2567_v49 = vld [vmem:[#allocation23_spill] sm:$0xff] }
 0x564   :  { %1354 = vmatprep.subr.bf16.mxu0 %v2094_v51  ;;  %1395 = vmatprep.subr.bf16.mxu1 %v2098_v52  ;;  %v2568_v51 = vld [vmem:[#allocation24_spill] sm:$0xff] }
 0x567   :  { %1355 = vmatpush1.bf16.msra.mxu0 %v2104_v54  ;;  %1396 = vmatpush1.bf16.msra.mxu1 %v2106_v55 }
 0x568   :  { %1356 = vmatprep.subr.bf16.mxu0 %v2110_v56  ;;  %1397 = vmatprep.subr.bf16.mxu1 %v2112_v57  ;;  %v2569_v56 = vld [vmem:[#allocation25_spill] sm:$0xff] }
 0x56b   :  { %1357 = vmatpush1.bf16.msra.mxu0 %v2116_v58  ;;  %1398 = vmatpush1.bf16.msra.mxu1 %v2118_v59  ;;  %v2570_v58 = vld [vmem:[#allocation26_spill] sm:$0xff] }
 0x56c   :  { %1358 = vmatprep.subr.bf16.mxu0 %v2122_v60  ;;  %1399 = vmatprep.subr.bf16.mxu1 %v2124_v61 }
 0x56f   :  { %1359 = vmatpush1.bf16.msra.mxu0 %v2130_v63  ;;  %1400 = vmatpush1.bf16.msra.mxu1 %v2132_v1 }
 0x570   :  { %1360 = vmatprep.subr.bf16.mxu0 %v2136_v2  ;;  %1401 = vmatprep.subr.bf16.mxu1 %v2138_v3 }
 0x573   :  { %1361 = vmatpush1.bf16.msra.mxu0 %v2142_v4  ;;  %1402 = vmatpush1.bf16.msra.mxu1 %v2144_v5 }
 0x574   :  { %1455 = vmatprep.subr.bf16.mxu0 %v1851_v45  ;;  %1496 = vmatprep.subr.bf16.mxu1 %v1852_v46  ;;  %v2573_v45 = vld [vmem:[#allocation29_spill] sm:$0xff] }
 0x629   :  { %v1271_v47 = vpop.f32.mrb[36].mxu0  ;;  %v1312_v48 = vpop.f32.mrb[36].mxu1 }
 0x62a   :  { %v1319_v50 = vadd.f32 %v1271_v47, %v2567_v49  ;;  %v1321_v52 = vadd.f32 %v1312_v48, %v2568_v51  ;;  %v1273_v54 = vpop.f32.mrb[37].mxu0  ;;  %v1314_v55 = vpop.f32.mrb[37].mxu1  ;;  %v2574_v47 = vld [vmem:[#allocation30_spill] sm:$0xff] }
 0x62b   :  { %v1320_v57 = vadd.f32 %v1273_v54, %v2569_v56  ;;  %v1322_v59 = vadd.f32 %v1314_v55, %v2570_v58  ;;  %v1275_v60 = vpop.f32.mrb[38].mxu0  ;;  %v1316_v61 = vpop.f32.mrb[38].mxu1 }
 0x62c   :  { %1813 = vtanh.f32 %v1319_v50  ;;  %v1276_v63 = vpop.f32.mrb[39].mxu0  ;;  %v1317_v1 = vpop.f32.mrb[39].mxu1 }
 0x62d   :  { %1815 = vtanh.f32 %v1320_v57 }
 0x62e   :  { %1817 = vtanh.f32 %v1322_v59 }
 0x62f   :  { %1819 = vtanh.f32 %v1321_v52 }
 0x636   :  { %v1814_v2 = vpop.eup %1813 }
 0x637   :  { %v1327_v3 = vmul.f32 0.5, %v1814_v2  ;;  %v1816_v4 = vpop.eup %1815 }
 0x638   :  { %v1328_v30 = vmul.f32 0.5, %v1816_v4  ;;  %v1818_v36 = vpop.eup %1817 }
 0x639   :  { %v1330_v5 = vadd.f32 0.5, %v1327_v3  ;;  %v1820_v41 = vpop.eup %1819 }
 0x63a   :  { %v1331_v37 = vadd.f32 0.5, %v1328_v30  ;;  %v1329_v42 = vmul.f32 0.5, %v1820_v41 }
 0x63b   :  { %v1334_v38 = vmul.f32 %v1818_v36, %v1330_v5 }
 0x63c   :  { %v1333_v39 = vmul.f32 %v1331_v37, %v2441_v0  ;;  %v1332_v43 = vadd.f32 0.5, %v1329_v42  ;;  %v1868_v0 = vld [vmem:[#allocation10 + $0xcc] ss:$16 sps:$4 sm:$0xff]   ;;  %v2576_v42 = vld [vmem:[#allocation32_spill] sm:$0xff] }
 0x63e   :  { %v2497_v40 = vadd.f32 %v1334_v38, %v1333_v39  ;;  %v2575_v39 = vld [vmem:[#allocation31_spill] sm:$0xff] }
 0x640   :  { %1821 = vtanh.f32 %v2497_v40 }
 0x64a   :  { %v1822_v53 = vpop.eup %1821 }
 0x64b   :  { %v1337_v13 = vmul.f32 %v1822_v53, %v1332_v43 }
 0x64d   :  { %v1345_v27 = vpack.c.bf16 %v1337_v13, %v1337_v13 }
 0x64f   :  { %1379 = vmatmul.mubr.bf16.vlgmr.msra.gmra.mrb[40].mxu0 %v1345_v27  ;;  %1420 = vmatmul.mubr.bf16.vlgmr.msra.gmra.mrb[40].mxu1 %v1345_v27  ;;  %v2577_v27 = vld [vmem:[#allocation33_spill] sm:$0xff] }
 0x650   :  { %1456 = vmatpush1.bf16.msra.mxu0 %v2444_v62  ;;  %1497 = vmatpush1.bf16.msra.mxu1 %v2447_v7 }
 0x651   :  { %1457 = vmatprep.subr.bf16.mxu0 %v2450_v28  ;;  %1498 = vmatprep.subr.bf16.mxu1 %v2453_v29  ;;  %v2571_v28 = vld [vmem:[#allocation27_spill] sm:$0xff] }
 0x652   :  { %1487 = vmatprep.mubr.bf16.mxu0 %v2558_v22  ;;  %1528 = vmatprep.mubr.bf16.mxu1 %v2558_v22  ;;  %v1859_v22 = vld [vmem:[#allocation10 + $0x84] ss:$16 sps:$4 sm:$0xff]  }
 0x654   :  { %1458 = vmatpush1.bf16.msra.mxu0 %v2458_v35  ;;  %1499 = vmatpush1.bf16.msra.mxu1 %v2461_v11  ;;  %v2572_v35 = vld [vmem:[#allocation28_spill] sm:$0xff] }
 0x655   :  { %1459 = vmatprep.subr.bf16.mxu0 %v2464_v10  ;;  %1500 = vmatprep.subr.bf16.mxu1 %v2467_v25 }
 0x658   :  { %1460 = vmatpush1.bf16.msra.mxu0 %v1853_v6  ;;  %1501 = vmatpush1.bf16.msra.mxu1 %v1854_v8  ;;  %v2578_v6 = vld [vmem:[#allocation34_spill] sm:$0xff] }
 0x659   :  { %1461 = vmatprep.subr.bf16.mxu0 %v1855_v12  ;;  %1502 = vmatprep.subr.bf16.mxu1 %v1856_v23 }
 0x65c   :  { %1462 = vmatpush1.bf16.msra.mxu0 %v1857_v31  ;;  %1503 = vmatpush1.bf16.msra.mxu1 %v1858_v33 }
 0x65d   :  { %1463 = vmatprep.subr.bf16.mxu0 %v1859_v22  ;;  %1504 = vmatprep.subr.bf16.mxu1 %v1860_v34 }
 0x660   :  { %1464 = vmatpush1.bf16.msra.mxu0 %v1861_v15  ;;  %1505 = vmatpush1.bf16.msra.mxu1 %v1862_v14 }
 0x661   :  { %1465 = vmatprep.subr.bf16.mxu0 %v1863_v16  ;;  %1506 = vmatprep.subr.bf16.mxu1 %v1864_v18 }
 0x664   :  { %1466 = vmatpush1.bf16.msra.mxu0 %v1865_v17  ;;  %1507 = vmatpush1.bf16.msra.mxu1 %v1866_v19 }
 0x665   :  { %1467 = vmatprep.subr.bf16.mxu0 %v1867_v20  ;;  %1508 = vmatprep.subr.bf16.mxu1 %v1868_v0 }
 0x668   :  { %1468 = vmatpush1.bf16.msra.mxu0 %v1869_v21  ;;  %1509 = vmatpush1.bf16.msra.mxu1 %v1870_v24 }
 0x669   :  { %1469 = vmatprep.subr.bf16.mxu0 %v1871_v32  ;;  %1510 = vmatprep.subr.bf16.mxu1 %v1872_v44 }
 0x66c   :  { %1470 = vmatpush1.bf16.msra.mxu0 %v1873_v26  ;;  %1511 = vmatpush1.bf16.msra.mxu1 %v1874_v9 }
 0x722   :  { %v1380_v62 = vpop.f32.mrb[40].mxu0  ;;  %v1421_v7 = vpop.f32.mrb[40].mxu1 }
 0x723   :  { %v1428_v29 = vadd.f32 %v1380_v62, %v2571_v28  ;;  %v1430_v11 = vadd.f32 %v1421_v7, %v2572_v35  ;;  %v1382_v10 = vpop.f32.mrb[41].mxu0  ;;  %v1423_v25 = vpop.f32.mrb[41].mxu1 }
 0x724   :  { %v1429_v46 = vadd.f32 %v1382_v10, %v2573_v45  ;;  %v1431_v48 = vadd.f32 %v1423_v25, %v2574_v47  ;;  %v1384_v49 = vpop.f32.mrb[42].mxu0  ;;  %v1425_v50 = vpop.f32.mrb[42].mxu1 }
 0x725   :  { %1823 = vtanh.f32 %v1428_v29  ;;  %v1385_v51 = vpop.f32.mrb[43].mxu0  ;;  %v1426_v52 = vpop.f32.mrb[43].mxu1 }
 0x726   :  { %1825 = vtanh.f32 %v1429_v46 }
 0x727   :  { %1827 = vtanh.f32 %v1431_v48 }
 0x728   :  { %1829 = vtanh.f32 %v1430_v11 }
 0x72f   :  { %v1824_v54 = vpop.eup %1823 }
 0x730   :  { %v1436_v55 = vmul.f32 0.5, %v1824_v54  ;;  %v1826_v56 = vpop.eup %1825 }
 0x731   :  { %v1437_v58 = vmul.f32 0.5, %v1826_v56  ;;  %v1828_v59 = vpop.eup %1827 }
 0x732   :  { %v1439_v57 = vadd.f32 0.5, %v1436_v55  ;;  %v1830_v2 = vpop.eup %1829 }
 0x733   :  { %v1440_v60 = vadd.f32 0.5, %v1437_v58  ;;  %v1438_v3 = vmul.f32 0.5, %v1830_v2 }
 0x734   :  { %v1443_v61 = vmul.f32 %v1828_v59, %v1439_v57 }
 0x735   :  { %v1442_v63 = vmul.f32 %v1440_v60, %v2497_v40  ;;  %v1441_v4 = vadd.f32 0.5, %v1438_v3 }
 0x737   :  { %v1444_v1 = vadd.f32 %v1443_v61, %v1442_v63 }
 0x739   :  { %1831 = vtanh.f32 %v1444_v1 }
 0x743   :  { %v1832_v5 = vpop.eup %1831 }
 0x744   :  { %v1446_v30 = vmul.f32 %v1832_v5, %v1441_v4 }
 0x746   :  { %v1454_v36 = vpack.c.bf16 %v1446_v30, %v1446_v30 }
 0x748   :  { %1488 = vmatmul.mubr.bf16.vlgmr.msra.gmra.mrb[44].mxu0 %v1454_v36  ;;  %1529 = vmatmul.mubr.bf16.vlgmr.msra.gmra.mrb[44].mxu1 %v1454_v36 }
 0x81b   :  { %v1489_v37 = vpop.f32.mrb[44].mxu0  ;;  %v1530_v38 = vpop.f32.mrb[44].mxu1 }
 0x81c   :  { %v1537_v41 = vadd.f32 %v1489_v37, %v2575_v39  ;;  %v1539_v43 = vadd.f32 %v1530_v38, %v2576_v42  ;;  %v1491_v53 = vpop.f32.mrb[45].mxu0  ;;  %v1532_v13 = vpop.f32.mrb[45].mxu1 }
 0x81d   :  { %v1538_v40 = vadd.f32 %v1491_v53, %v2577_v27  ;;  %v1540_v8 = vadd.f32 %v1532_v13, %v2578_v6  ;;  %v1493_v12 = vpop.f32.mrb[46].mxu0  ;;  %v1534_v23 = vpop.f32.mrb[46].mxu1 }
 0x81e   :  { %1833 = vtanh.f32 %v1537_v41  ;;  %v1494_v31 = vpop.f32.mrb[47].mxu0  ;;  %v1535_v33 = vpop.f32.mrb[47].mxu1 }
 0x81f   :  { %1835 = vtanh.f32 %v1538_v40 }
 0x820   :  { %1837 = vtanh.f32 %v1540_v8 }
 0x821   :  { %1839 = vtanh.f32 %v1539_v43 }
 0x828   :  { %v1834_v22 = vpop.eup %1833 }
 0x829   :  { %v1545_v34 = vmul.f32 0.5, %v1834_v22  ;;  %v1836_v15 = vpop.eup %1835 }
 0x82a   :  { %v1546_v16 = vmul.f32 0.5, %v1836_v15  ;;  %v1838_v18 = vpop.eup %1837 }
 0x82b   :  { %v1548_v14 = vadd.f32 0.5, %v1545_v34  ;;  %v1840_v21 = vpop.eup %1839 }
 0x82c   :  { %v1549_v17 = vadd.f32 0.5, %v1546_v16  ;;  %v1547_v24 = vmul.f32 0.5, %v1840_v21 }
 0x82d   :  { %v1552_v19 = vmul.f32 %v1838_v18, %v1548_v14 }
 0x82e   :  { %v1551_v20 = vmul.f32 %v1549_v17, %v1444_v1  ;;  %v1550_v32 = vadd.f32 0.5, %v1547_v24 }
 0x830   :  { %v1553_v0 = vadd.f32 %v1552_v19, %v1551_v20 }
 0x832   :  { %1841 = vtanh.f32 %v1553_v0 }
 0x83c   :  { %v1842_v44 = vpop.eup %1841 }
 0x83d   :  { %v1555_v26 = vmul.f32 %v1842_v44, %v1550_v32 }
 0x83f   :  { %1561 = vst [vmem:[#allocation11] sm:$0xff] %v1555_v26 }
 0x840   :  { %1952 = shalt.err (!%p1949_p0)
}
 0x841   :  { %s1953_s6 = scalar_lea.hbm %s2535_s4, 128 }
 0x842   :  { %p1954_p1 = scmp.ne.s32.totalorder %s2535_s4, %s1953_s6  ;;  %p1957_p2 = scmp.lt.u32.totalorder %s1953_s6, %s2535_s4 }
 0x844   :  { %p1959_p3 = pnand %p1957_p2, %p1954_p1 }
 0x846   :  { %1962 = shalt.err (!%p1959_p3)
}
 0x847   :  { %1571 = dma.vmem_to_hbm [thread:$0]  %s1569_s26, 128, %s2535_s4, [#allocation7]  }
 0x848   :  { %1967 = dma.done.wait [#allocation7], 128  }
 0x849   :  { %1968 = vsyncadd [#allocation7], 4294967168 }
 0x84a   :  { %1575 = vsyncpa [#allocation6], 1 }
 0x84b   :  { %1576 = vsyncpa [#allocation9], 1 }
 0x84c   :  { %1577 = vsyncpa [#allocation7], 1 }

</bundles_post_ra>
